<compile_context>
chip_gen: v7x
topology: tpu7x:2x2x1
jax: 0.10.0
libtpu: 0.0.40
codegen_flags: <defaults>
</compile_context>

<pallas_src>
import math

import numpy as np
import jax
import jax.numpy as jnp
from jax.experimental import pallas as pl
from jax.experimental.pallas import tpu as pltpu


KERNEL_PARAM_ORDER = [
    "ln1_g", "ln1_b",
    "w_in",                 # fused [w_in_x | w_in_z], bf16, lane-padded to 128-multiples
    "conv_w", "conv_b",
    "w_xp",                 # fused [w_x_dt | w_x_B | w_x_C], bf16, lane-padded
    "w_dt", "b_dt",
    "a_T", "d_p",           # a_T = -exp(a_log) (d_state, d_inner), precomputed
    "w_out",
    "ln2_g", "ln2_b",
    "w1", "b1", "w2", "b2",
]


def _round_up(n, m):
    return ((n + m - 1) // m) * m


def _pad_cols(w, width):
    pad = width - w.shape[1]
    if pad == 0:
        return w
    return jnp.concatenate([w, jnp.zeros((w.shape[0], pad), w.dtype)], axis=1)


def _vmem_limit_bytes():
    """Scoped-VMEM budget per chip generation: ~3/4 of physical VMEM (96 MiB on
    128-MiB v5e/v6e, 48 MiB on 64-MiB v7x), conservative fallback otherwise."""
    try:
        cap = int(pltpu.get_tpu_info().vmem_capacity_bytes)
    except Exception:
        cap = 64 * 1024 * 1024
    return max(32 * 1024 * 1024, min(cap * 3 // 4, 112 * 1024 * 1024))


def _pick_block_batch(Bsz, L, max_rows=512):
    """Largest divisor of Bsz with Bb*L token rows VMEM-friendly, capped so the
    batch grid has >= 2 steps (lets v7x shard across both TensorCores).
    For real sizes, target Bb*L as a multiple of 256 (v6e/v7x) / 128 (v5e)."""
    cap = Bsz // 2 if Bsz >= 2 else 1
    bb = 1
    for cand in range(1, Bsz + 1):
        if Bsz % cand == 0 and cand <= cap and cand * L <= max(max_rows, L):
            bb = cand
    return bb


def _pick_scan_chunk(L, max_chunk=32):
    """Largest divisor of L that is <= max_chunk (scan chunk length Tc)."""
    for c in range(min(L, max_chunk), 0, -1):
        if L % c == 0:
            return c
    return L


def _make_block_kernel(*, d_inner, d_state, dt_rank, d_conv,
                       seg_in, seg_dt, seg_s, Tc):
    """Builds the fused Block kernel for the given (static) model dimensions."""

    def kernel(x_ref, ln1g, ln1b, w_in, conv_w, conv_b, w_xp, w_dt, b_dt,
               a_T, d_p, w_out, ln2g, ln2b, w1, b1, w2, b2,
               o_ref, dt_scr, dtx_scr, b_scr, c_scr, y_scr):
        Bb, L, D = x_ref.shape
        N = Bb * L

        def layer_norm(v, g, b):
            mu = jnp.mean(v, axis=-1, keepdims=True)
            var = jnp.mean(jnp.square(v - mu), axis=-1, keepdims=True)
            return (v - mu) * jax.lax.rsqrt(var + 1e-5) * g + b

        def silu(v):                      # v * sigmoid(v), tanh form (no inf*0)
            return v * (0.5 * (jnp.tanh(0.5 * v) + 1.0))

        def softplus(v):
            return jnp.maximum(v, 0.0) + jnp.log(1.0 + jnp.exp(-jnp.abs(v)))

        x = x_ref[...].astype(jnp.float32).reshape(N, D)            # (N, D)

        # ---------------- Mamba( LayerNorm1(x) ) ----------------
        W_in = w_in[...]                                            # bf16 (D, 2*seg_in)
        xn = layer_norm(x, ln1g[...], ln1b[...])
        xz = jnp.dot(xn.astype(W_in.dtype), W_in,
                     preferred_element_type=jnp.float32)            # (N, 2*seg_in)
        xm = xz[:, 0:d_inner]                                       # in_proj x path
        zg = xz[:, seg_in:seg_in + d_inner]                         # gate path

        # Depthwise causal Conv1d (kernel=d_conv, left pad d_conv-1), vectorized
        # over the full (N, d_inner) tile; shifts via XLU roll + causal mask
        # (mask also stops cross-batch-element leakage inside the tile).
        cw = conv_w[...]                                            # (d_conv, d_inner)
        pos = jax.lax.broadcasted_iota(jnp.int32, (N, 1), 0) % L
        acc = conv_b[...] + cw[d_conv - 1:d_conv, :] * xm           # tap with shift 0
        for k in range(d_conv - 1):
            s = d_conv - 1 - k                                      # static shift >= 1
            shifted = pltpu.roll(xm, shift=s, axis=0)               # rolled[i] = xm[i-s]
            shifted = jnp.where(pos >= s, shifted, 0.0)
            acc = acc + cw[k:k + 1, :] * shifted
        xc = silu(acc)                                              # (N, d_inner)

        # Fused x_proj: one lane-dense bf16 matmul -> [dt_lo | B | C] (128-aligned slices).
        W_xp = w_xp[...]
        proj = jnp.dot(xc.astype(W_xp.dtype), W_xp,
                       preferred_element_type=jnp.float32)          # (N, seg_dt+2*seg_s)
        dt_lo = proj[:, 0:dt_rank]
        Bm = proj[:, seg_dt:seg_dt + d_state]
        Cm = proj[:, seg_dt + seg_s:seg_dt + seg_s + d_state]
        dt = softplus(jnp.dot(dt_lo, w_dt[...],
                              preferred_element_type=jnp.float32) + b_dt[...])  # (N, d_inner)

        # Stash chunked-scan inputs in VMEM scratch (read back per L-chunk).
        dt_scr[...] = dt.reshape(Bb, L, d_inner)
        dtx_scr[...] = (dt * xc).reshape(Bb, L, d_inner)
        b_scr[...] = Bm.reshape(Bb, L, d_state)
        c_scr[...] = Cm.reshape(Bb, L, d_state)

        A_T = a_T[...]                                              # (d_state, d_inner)

        # Selective scan, chunked over L: per chunk compute exp(dt*A) and B*dt*x,
        # run the short recurrence in vregs, store the chunk's y rows once.
        def chunk_body(c, h):
            t0 = pl.multiple_of(c * Tc, Tc)
            dt_c = dt_scr[:, pl.ds(t0, Tc), :]                      # (Bb, Tc, d_inner)
            dtx_c = dtx_scr[:, pl.ds(t0, Tc), :]
            B_c = b_scr[:, pl.ds(t0, Tc), :]                        # (Bb, Tc, d_state)
            C_c = c_scr[:, pl.ds(t0, Tc), :]
            dA_c = jnp.exp(dt_c[:, :, None, :] * A_T)               # (Bb, Tc, d_state, d_inner)
            Bu_c = B_c[..., None] * dtx_c[:, :, None, :]            # (Bb, Tc, d_state, d_inner)
            ys = []
            for t in range(Tc):                                     # static inner unroll
                h = dA_c[:, t] * h + Bu_c[:, t]                     # (Bb, d_state, d_inner)
                ys.append(jnp.sum(C_c[:, t, :, None] * h, axis=1))  # (Bb, d_inner)
            y_scr[:, pl.ds(t0, Tc), :] = jnp.stack(ys, axis=1)      # one store per chunk
            return h

        jax.lax.fori_loop(0, L // Tc, chunk_body,
                          jnp.zeros((Bb, d_state, d_inner), jnp.float32))

        y = y_scr[...].reshape(N, d_inner)
        y = y + xc * d_p[...]
        y = y * silu(zg)                                            # gate
        W_out = w_out[...]
        x1 = x + jnp.dot(y.astype(W_out.dtype), W_out,
                         preferred_element_type=jnp.float32)        # residual 1

        # ---------------- FeedForward( LayerNorm2(x1) ) ----------------
        W1 = w1[...]
        W2 = w2[...]
        x2n = layer_norm(x1, ln2g[...], ln2b[...]).astype(W1.dtype)
        hid = jnp.maximum(
            jnp.dot(x2n, W1, preferred_element_type=jnp.float32) + b1[...], 0.0)
        ffn = jnp.dot(hid.astype(W2.dtype), W2,
                      preferred_element_type=jnp.float32) + b2[...]
        # TODO(synk): nn.Dropout is identity in eval mode; training-mode RNG dropout not implemented.
        o_ref[...] = (x1 + ffn).reshape(Bb, L, D).astype(o_ref.dtype)   # residual 2

    return kernel


def _prepare_kernel_params(params):
    """Fuse/pad/cast the per-matrix params into the kernel-facing param set."""
    d_inner = params["w_in_x"].shape[1]
    d_state = params["w_x_B"].shape[1]
    dt_rank = params["w_x_dt"].shape[1]
    d_conv = params["conv_w"].shape[0]
    seg_in = _round_up(d_inner, 128)
    seg_dt = _round_up(dt_rank, 128)
    seg_s = _round_up(d_state, 128)
    bf16 = jnp.bfloat16
    kp = {
        "ln1_g": params["ln1_g"], "ln1_b": params["ln1_b"],
        "w_in": jnp.concatenate(
            [_pad_cols(params["w_in_x"], seg_in),
             _pad_cols(params["w_in_z"], seg_in)], axis=1).astype(bf16),
        "conv_w": params["conv_w"], "conv_b": params["conv_b"],
        "w_xp": jnp.concatenate(
            [_pad_cols(params["w_x_dt"], seg_dt),
             _pad_cols(params["w_x_B"], seg_s),
             _pad_cols(params["w_x_C"], seg_s)], axis=1).astype(bf16),
        "w_dt": params["w_dt"], "b_dt": params["b_dt"],
        "a_T": -jnp.exp(params["a_logT"]),      # precomputed once in the wrapper
        "d_p": params["d_p"],
        "w_out": params["w_out"].astype(bf16),
        "ln2_g": params["ln2_g"], "ln2_b": params["ln2_b"],
        "w1": params["w1"].astype(bf16), "b1": params["b1"],
        "w2": params["w2"].astype(bf16), "b2": params["b2"],
    }
    dims = dict(d_inner=d_inner, d_state=d_state, dt_rank=dt_rank, d_conv=d_conv,
                seg_in=seg_in, seg_dt=seg_dt, seg_s=seg_s)
    return kp, dims


def block_forward(x, params, block_batch=None):
    Bsz, L, D = x.shape
    kp, dims = _prepare_kernel_params(params)
    plist = [kp[k] for k in KERNEL_PARAM_ORDER]

    Bb = block_batch if block_batch is not None else _pick_block_batch(Bsz, L)
    assert Bsz % Bb == 0
    Tc = _pick_scan_chunk(L)

    kernel = _make_block_kernel(Tc=Tc, **dims)

    in_specs = [pl.BlockSpec((Bb, L, D), lambda b: (b, 0, 0))]
    for pv in plist:
        # Weights are grid-invariant (constant index_map): single-buffer them so
        # only one VMEM copy is resident (halves weight VMEM, key on v7x 64 MiB).
        in_specs.append(pl.BlockSpec(pv.shape, lambda b, _nd=pv.ndim: (0,) * _nd,
                                     pipeline_mode=pl.Buffered(1)))

    d_inner, d_state = dims["d_inner"], dims["d_state"]
    grid_spec = pltpu.PrefetchScalarGridSpec(
        num_scalar_prefetch=0,
        grid=(Bsz // Bb,),
        in_specs=in_specs,
        out_specs=pl.BlockSpec((Bb, L, D), lambda b: (b, 0, 0)),
        scratch_shapes=[
            pltpu.VMEM((Bb, L, d_inner), jnp.float32),   # dt
            pltpu.VMEM((Bb, L, d_inner), jnp.float32),   # dt * x
            pltpu.VMEM((Bb, L, d_state), jnp.float32),   # B
            pltpu.VMEM((Bb, L, d_state), jnp.float32),   # C
            pltpu.VMEM((Bb, L, d_inner), jnp.float32),   # scan output y
        ],
    )
    return pl.pallas_call(
        kernel,
        out_shape=jax.ShapeDtypeStruct((Bsz, L, D), x.dtype),
        grid_spec=grid_spec,
        compiler_params=pltpu.CompilerParams(
            dimension_semantics=("parallel",),           # batch blocks independent
            vmem_limit_bytes=_vmem_limit_bytes()),
    )(x, *plist)


def init_params(key, n_embed, d_state, d_conv, expand):
    d_inner = expand * n_embed
    dt_rank = math.ceil(n_embed / 16)
    ks = jax.random.split(key, 12)
    s = 0.05
    p = {}
    p["ln1_g"] = jnp.ones((1, n_embed), jnp.float32)
    p["ln1_b"] = jnp.zeros((1, n_embed), jnp.float32)
    p["w_in_x"] = jax.random.normal(ks[0], (n_embed, d_inner), jnp.float32) * s
    p["w_in_z"] = jax.random.normal(ks[1], (n_embed, d_inner), jnp.float32) * s
    p["conv_w"] = jax.random.normal(ks[2], (d_conv, d_inner), jnp.float32) * s
    p["conv_b"] = jax.random.normal(ks[3], (1, d_inner), jnp.float32) * s
    p["w_x_dt"] = jax.random.normal(ks[4], (d_inner, dt_rank), jnp.float32) * s
    p["w_x_B"] = jax.random.normal(ks[5], (d_inner, d_state), jnp.float32) * s
    p["w_x_C"] = jax.random.normal(ks[6], (d_inner, d_state), jnp.float32) * s
    p["w_dt"] = jax.random.normal(ks[7], (dt_rank, d_inner), jnp.float32) * s
    p["b_dt"] = jnp.full((1, d_inner), -2.0, jnp.float32)
    # Mamba A init: A[d, n] = n + 1  -> stored transposed (d_state, d_inner)
    a = jnp.tile(jnp.arange(1, d_state + 1, dtype=jnp.float32)[:, None], (1, d_inner))
    p["a_logT"] = jnp.log(a)
    p["d_p"] = jnp.ones((1, d_inner), jnp.float32)
    p["w_out"] = jax.random.normal(ks[8], (d_inner, n_embed), jnp.float32) * s
    p["ln2_g"] = jnp.ones((1, n_embed), jnp.float32)
    p["ln2_b"] = jnp.zeros((1, n_embed), jnp.float32)
    p["w1"] = jax.random.normal(ks[9], (n_embed, 4 * n_embed), jnp.float32) * s
    p["b1"] = jnp.zeros((1, 4 * n_embed), jnp.float32)
    p["w2"] = jax.random.normal(ks[10], (4 * n_embed, n_embed), jnp.float32) * s
    p["b2"] = jnp.zeros((1, n_embed), jnp.float32)
    return p, d_inner, dt_rank


def ref_block(x, p, d_conv):
    """Pure-numpy (float64) reference of the Block forward."""
    x = np.asarray(x, np.float64)
    P = {k: np.asarray(v, np.float64) for k, v in p.items()}
    Bsz, L, D = x.shape
    d_inner = P["w_in_x"].shape[1]
    d_state = P["w_x_B"].shape[1]

    def ln(v, g, b):
        mu = v.mean(-1, keepdims=True)
        var = ((v - mu) ** 2).mean(-1, keepdims=True)
        return (v - mu) / np.sqrt(var + 1e-5) * g + b

    def silu(v):
        return v / (1.0 + np.exp(-v))

    def softplus(v):
        return np.maximum(v, 0.0) + np.log1p(np.exp(-np.abs(v)))

    out = np.zeros_like(x)
    for bi in range(Bsz):
        xb = x[bi]
        xn = ln(xb, P["ln1_g"][0], P["ln1_b"][0])
        xm = xn @ P["w_in_x"]
        zg = xn @ P["w_in_z"]
        conv = np.zeros((L, d_inner))
        for t in range(L):
            acc = P["conv_b"][0].copy()
            for k in range(d_conv):
                idx = t - (d_conv - 1) + k
                if idx >= 0:
                    acc = acc + P["conv_w"][k] * xm[idx]
            conv[t] = acc
        xc = silu(conv)
        dt_lo = xc @ P["w_x_dt"]                          # (L, dt_rank)
        Bm = xc @ P["w_x_B"]
        Cm = xc @ P["w_x_C"]
        dt = softplus(dt_lo @ P["w_dt"] + P["b_dt"][0])   # (L, d_inner)
        A = -np.exp(P["a_logT"]).T                        # (d_inner, d_state)
        h = np.zeros((d_inner, d_state))
        ys = np.zeros((L, d_inner))
        for t in range(L):
            dA = np.exp(dt[t][:, None] * A)
            h = dA * h + (dt[t] * xc[t])[:, None] * Bm[t][None, :]
            ys[t] = (h * Cm[t][None, :]).sum(-1)
        y = ys + xc * P["d_p"][0]
        y = y * silu(zg)
        x1 = xb + y @ P["w_out"]
        x2n = ln(x1, P["ln2_g"][0], P["ln2_b"][0])
        ffn = np.maximum(x2n @ P["w1"] + P["b1"][0], 0.0) @ P["w2"] + P["b2"][0]
        out[bi] = x1 + ffn
    return out


if __name__ == "__main__":
    Bsz, L = 2, 8
    n_embed, d_state, d_conv, expand = 32, 16, 4, 2
    dropout = 0.1  # identity at inference

    key = jax.random.PRNGKey(0)
    kx, kp = jax.random.split(key)
    x = jax.random.normal(kx, (Bsz, L, n_embed), jnp.float32)
    params, d_inner, dt_rank = init_params(kp, n_embed, d_state, d_conv, expand)

    out = block_forward(x, params)
    out = jax.block_until_ready(out)

    assert out.shape == (Bsz, L, n_embed)
    out_np = np.asarray(out)
    assert np.all(np.isfinite(out_np))

    ref = ref_block(np.asarray(x), params, d_conv)
    np.testing.assert_allclose(out_np, ref, rtol=2e-2, atol=2e-2)

    print("KERNEL_OK")
</pallas_src>

<mosaic_0001>
module attributes {stable_mosaic.version = 11 : i64} {
  func.func @kernel(%arg0: i32, %arg1: memref<1x8x32xf32, #tpu.memory_space<vmem>>, %arg2: memref<1x32xf32, #tpu.memory_space<vmem>>, %arg3: memref<1x32xf32, #tpu.memory_space<vmem>>, %arg4: memref<32x256xbf16, #tpu.memory_space<vmem>>, %arg5: memref<4x64xf32, #tpu.memory_space<vmem>>, %arg6: memref<1x64xf32, #tpu.memory_space<vmem>>, %arg7: memref<64x384xbf16, #tpu.memory_space<vmem>>, %arg8: memref<2x64xf32, #tpu.memory_space<vmem>>, %arg9: memref<1x64xf32, #tpu.memory_space<vmem>>, %arg10: memref<16x64xf32, #tpu.memory_space<vmem>>, %arg11: memref<1x64xf32, #tpu.memory_space<vmem>>, %arg12: memref<64x32xbf16, #tpu.memory_space<vmem>>, %arg13: memref<1x32xf32, #tpu.memory_space<vmem>>, %arg14: memref<1x32xf32, #tpu.memory_space<vmem>>, %arg15: memref<32x128xbf16, #tpu.memory_space<vmem>>, %arg16: memref<1x128xf32, #tpu.memory_space<vmem>>, %arg17: memref<128x32xbf16, #tpu.memory_space<vmem>>, %arg18: memref<1x32xf32, #tpu.memory_space<vmem>>, %arg19: memref<1x8x32xf32, #tpu.memory_space<vmem>>, %arg20: memref<1x8x64xf32, #tpu.memory_space<vmem>>, %arg21: memref<1x8x64xf32, #tpu.memory_space<vmem>>, %arg22: memref<1x8x16xf32, #tpu.memory_space<vmem>>, %arg23: memref<1x8x16xf32, #tpu.memory_space<vmem>>, %arg24: memref<1x8x64xf32, #tpu.memory_space<vmem>>) attributes {dimension_semantics = [#tpu.dimension_semantics<parallel>], iteration_bounds = array<i64: 2>, scalar_prefetch = 0 : i64, scratch_operands = 5 : i64, tpu.core_type = #tpu.core_type<tc>, window_params = [{transform_indices = @transform_0, window_bounds = array<i64: 1, 8, 32>}, {pipeline_mode = #tpu.pipeline_mode<synchronous>, transform_indices = @transform_1, window_bounds = array<i64: 1, 32>}, {pipeline_mode = #tpu.pipeline_mode<synchronous>, transform_indices = @transform_2, window_bounds = array<i64: 1, 32>}, {pipeline_mode = #tpu.pipeline_mode<synchronous>, transform_indices = @transform_3, window_bounds = array<i64: 32, 256>}, {pipeline_mode = #tpu.pipeline_mode<synchronous>, transform_indices = @transform_4, window_bounds = array<i64: 4, 64>}, {pipeline_mode = #tpu.pipeline_mode<synchronous>, transform_indices = @transform_5, window_bounds = array<i64: 1, 64>}, {pipeline_mode = #tpu.pipeline_mode<synchronous>, transform_indices = @transform_6, window_bounds = array<i64: 64, 384>}, {pipeline_mode = #tpu.pipeline_mode<synchronous>, transform_indices = @transform_7, window_bounds = array<i64: 2, 64>}, {pipeline_mode = #tpu.pipeline_mode<synchronous>, transform_indices = @transform_8, window_bounds = array<i64: 1, 64>}, {pipeline_mode = #tpu.pipeline_mode<synchronous>, transform_indices = @transform_9, window_bounds = array<i64: 16, 64>}, {pipeline_mode = #tpu.pipeline_mode<synchronous>, transform_indices = @transform_10, window_bounds = array<i64: 1, 64>}, {pipeline_mode = #tpu.pipeline_mode<synchronous>, transform_indices = @transform_11, window_bounds = array<i64: 64, 32>}, {pipeline_mode = #tpu.pipeline_mode<synchronous>, transform_indices = @transform_12, window_bounds = array<i64: 1, 32>}, {pipeline_mode = #tpu.pipeline_mode<synchronous>, transform_indices = @transform_13, window_bounds = array<i64: 1, 32>}, {pipeline_mode = #tpu.pipeline_mode<synchronous>, transform_indices = @transform_14, window_bounds = array<i64: 32, 128>}, {pipeline_mode = #tpu.pipeline_mode<synchronous>, transform_indices = @transform_15, window_bounds = array<i64: 1, 128>}, {pipeline_mode = #tpu.pipeline_mode<synchronous>, transform_indices = @transform_16, window_bounds = array<i64: 128, 32>}, {pipeline_mode = #tpu.pipeline_mode<synchronous>, transform_indices = @transform_17, window_bounds = array<i64: 1, 32>}, {transform_indices = @transform_18, window_bounds = array<i64: 1, 8, 32>}]} {
    %c0 = arith.constant 0 : index
    %c0_0 = arith.constant 0 : index
    %c0_1 = arith.constant 0 : index
    %0 = vector.load %arg1[%c0, %c0_0, %c0_1] : memref<1x8x32xf32, #tpu.memory_space<vmem>>, vector<1x8x32xf32>
    %1 = vector.shape_cast %0 : vector<1x8x32xf32> to vector<8x32xf32>
    %c0_2 = arith.constant 0 : index
    %c0_3 = arith.constant 0 : index
    %2 = vector.load %arg4[%c0_2, %c0_3] : memref<32x256xbf16, #tpu.memory_space<vmem>>, vector<32x256xbf16>
    %c0_4 = arith.constant 0 : index
    %c0_5 = arith.constant 0 : index
    %3 = vector.load %arg2[%c0_4, %c0_5] : memref<1x32xf32, #tpu.memory_space<vmem>>, vector<1x32xf32>
    %c0_6 = arith.constant 0 : index
    %c0_7 = arith.constant 0 : index
    %4 = vector.load %arg3[%c0_6, %c0_7] : memref<1x32xf32, #tpu.memory_space<vmem>>, vector<1x32xf32>
    %cst = arith.constant dense<0.000000e+00> : vector<8xf32>
    %5 = vector.multi_reduction <add>, %1, %cst [1] : vector<8x32xf32> to vector<8xf32>
    %6 = vector.shape_cast %5 : vector<8xf32> to vector<8x1xf32>
    %cst_8 = arith.constant 3.200000e+01 : f32
    %7 = vector.broadcast %cst_8 : f32 to vector<8x1xf32>
    %8 = arith.divf %6, %7 : vector<8x1xf32>
    %9 = vector.broadcast %8 : vector<8x1xf32> to vector<8x32xf32>
    %10 = arith.subf %1, %9 : vector<8x32xf32>
    %11 = arith.mulf %10, %10 : vector<8x32xf32>
    %cst_9 = arith.constant dense<0.000000e+00> : vector<8xf32>
    %12 = vector.multi_reduction <add>, %11, %cst_9 [1] : vector<8x32xf32> to vector<8xf32>
    %13 = vector.shape_cast %12 : vector<8xf32> to vector<8x1xf32>
    %cst_10 = arith.constant 3.200000e+01 : f32
    %14 = vector.broadcast %cst_10 : f32 to vector<8x1xf32>
    %15 = arith.divf %13, %14 : vector<8x1xf32>
    %16 = vector.broadcast %8 : vector<8x1xf32> to vector<8x32xf32>
    %17 = arith.subf %1, %16 : vector<8x32xf32>
    %cst_11 = arith.constant 9.99999974E-6 : f32
    %18 = vector.broadcast %cst_11 : f32 to vector<8x1xf32>
    %19 = arith.addf %15, %18 : vector<8x1xf32>
    %20 = math.rsqrt %19 : vector<8x1xf32>
    %21 = vector.broadcast %20 : vector<8x1xf32> to vector<8x32xf32>
    %22 = arith.mulf %17, %21 : vector<8x32xf32>
    %23 = vector.broadcast %3 : vector<1x32xf32> to vector<8x32xf32>
    %24 = arith.mulf %22, %23 : vector<8x32xf32>
    %25 = vector.broadcast %4 : vector<1x32xf32> to vector<8x32xf32>
    %26 = arith.addf %24, %25 : vector<8x32xf32>
    %27 = arith.truncf %26 : vector<8x32xf32> to vector<8x32xbf16>
    %cst_12 = arith.constant dense<0.000000e+00> : vector<8x256xf32>
    %28 = tpu.matmul %27, %2, %cst_12 {dimension_numbers = #tpu.dot_dimension_numbers<[1], [0], [0], [1], [0, 0, 1, 1], [], []>} : vector<8x32xbf16>, vector<32x256xbf16>, vector<8x256xf32> -> vector<8x256xf32>
    %29 = vector.extract_strided_slice %28 {offsets = [0, 0], sizes = [8, 64], strides = [1, 1]} : vector<8x256xf32> to vector<8x64xf32>
    %30 = vector.extract_strided_slice %28 {offsets = [0, 128], sizes = [8, 64], strides = [1, 1]} : vector<8x256xf32> to vector<8x64xf32>
    %c0_13 = arith.constant 0 : index
    %c0_14 = arith.constant 0 : index
    %31 = vector.load %arg5[%c0_13, %c0_14] : memref<4x64xf32, #tpu.memory_space<vmem>>, vector<4x64xf32>
    %32 = tpu.iota {dimensions = array<i32: 0>} : vector<8x1xi32>
    %c8_i32 = arith.constant 8 : i32
    %c0_i32 = arith.constant 0 : i32
    %33 = arith.cmpi eq, %c8_i32, %c0_i32 : i32
    %c1_i32 = arith.constant 1 : i32
    %34 = arith.select %33, %c1_i32, %c8_i32 : i32
    %35 = vector.broadcast %34 : i32 to vector<8x1xi32>
    %36 = arith.remsi %32, %35 : vector<8x1xi32>
    %c0_i32_15 = arith.constant 0 : i32
    %37 = vector.broadcast %c0_i32_15 : i32 to vector<8x1xi32>
    %38 = arith.cmpi ne, %36, %37 : vector<8x1xi32>
    %c0_i32_16 = arith.constant 0 : i32
    %39 = vector.broadcast %c0_i32_16 : i32 to vector<8x1xi32>
    %40 = arith.cmpi slt, %36, %39 : vector<8x1xi32>
    %c0_i32_17 = arith.constant 0 : i32
    %41 = arith.cmpi slt, %34, %c0_i32_17 : i32
    %42 = vector.broadcast %41 : i1 to vector<8x1xi1>
    %43 = vector.broadcast %42 : vector<8x1xi1> to vector<8x1xi1>
    %44 = arith.xori %40, %43 : vector<8x1xi1>
    %45 = arith.andi %44, %38 : vector<8x1xi1>
    %46 = vector.broadcast %34 : i32 to vector<8x1xi32>
    %47 = arith.addi %36, %46 : vector<8x1xi32>
    %48 = arith.select %45, %47, %36 : vector<8x1xi1>, vector<8x1xi32>
    %c0_18 = arith.constant 0 : index
    %c0_19 = arith.constant 0 : index
    %49 = vector.load %arg6[%c0_18, %c0_19] : memref<1x64xf32, #tpu.memory_space<vmem>>, vector<1x64xf32>
    %50 = vector.extract_strided_slice %31 {offsets = [3, 0], sizes = [1, 64], strides = [1, 1]} : vector<4x64xf32> to vector<1x64xf32>
    %51 = vector.broadcast %50 : vector<1x64xf32> to vector<8x64xf32>
    %52 = arith.mulf %51, %29 : vector<8x64xf32>
    %53 = vector.broadcast %49 : vector<1x64xf32> to vector<8x64xf32>
    %54 = arith.addf %53, %52 : vector<8x64xf32>
    %c3_i32 = arith.constant 3 : i32
    %55 = tpu.dynamic_rotate %29 by %c3_i32 dim 0 : vector<8x64xf32>, i32 -> vector<8x64xf32>
    %c3_i32_20 = arith.constant 3 : i32
    %56 = vector.broadcast %c3_i32_20 : i32 to vector<8x1xi32>
    %57 = arith.cmpi sge, %48, %56 : vector<8x1xi32>
    %cst_21 = arith.constant 0.000000e+00 : f32
    %58 = vector.shape_cast %57 : vector<8x1xi1> to vector<8x1xi1>
    %59 = vector.broadcast %58 : vector<8x1xi1> to vector<8x64xi1>
    %60 = vector.broadcast %cst_21 : f32 to vector<8x64xf32>
    %61 = arith.select %59, %55, %60 : vector<8x64xi1>, vector<8x64xf32>
    %62 = vector.extract_strided_slice %31 {offsets = [0, 0], sizes = [1, 64], strides = [1, 1]} : vector<4x64xf32> to vector<1x64xf32>
    %63 = vector.broadcast %62 : vector<1x64xf32> to vector<8x64xf32>
    %64 = arith.mulf %63, %61 : vector<8x64xf32>
    %65 = arith.addf %54, %64 : vector<8x64xf32>
    %c2_i32 = arith.constant 2 : i32
    %66 = tpu.dynamic_rotate %29 by %c2_i32 dim 0 : vector<8x64xf32>, i32 -> vector<8x64xf32>
    %c2_i32_22 = arith.constant 2 : i32
    %67 = vector.broadcast %c2_i32_22 : i32 to vector<8x1xi32>
    %68 = arith.cmpi sge, %48, %67 : vector<8x1xi32>
    %cst_23 = arith.constant 0.000000e+00 : f32
    %69 = vector.shape_cast %68 : vector<8x1xi1> to vector<8x1xi1>
    %70 = vector.broadcast %69 : vector<8x1xi1> to vector<8x64xi1>
    %71 = vector.broadcast %cst_23 : f32 to vector<8x64xf32>
    %72 = arith.select %70, %66, %71 : vector<8x64xi1>, vector<8x64xf32>
    %73 = vector.extract_strided_slice %31 {offsets = [1, 0], sizes = [1, 64], strides = [1, 1]} : vector<4x64xf32> to vector<1x64xf32>
    %74 = vector.broadcast %73 : vector<1x64xf32> to vector<8x64xf32>
    %75 = arith.mulf %74, %72 : vector<8x64xf32>
    %76 = arith.addf %65, %75 : vector<8x64xf32>
    %c1_i32_24 = arith.constant 1 : i32
    %77 = tpu.dynamic_rotate %29 by %c1_i32_24 dim 0 : vector<8x64xf32>, i32 -> vector<8x64xf32>
    %c1_i32_25 = arith.constant 1 : i32
    %78 = vector.broadcast %c1_i32_25 : i32 to vector<8x1xi32>
    %79 = arith.cmpi sge, %48, %78 : vector<8x1xi32>
    %cst_26 = arith.constant 0.000000e+00 : f32
    %80 = vector.shape_cast %79 : vector<8x1xi1> to vector<8x1xi1>
    %81 = vector.broadcast %80 : vector<8x1xi1> to vector<8x64xi1>
    %82 = vector.broadcast %cst_26 : f32 to vector<8x64xf32>
    %83 = arith.select %81, %77, %82 : vector<8x64xi1>, vector<8x64xf32>
    %84 = vector.extract_strided_slice %31 {offsets = [2, 0], sizes = [1, 64], strides = [1, 1]} : vector<4x64xf32> to vector<1x64xf32>
    %85 = vector.broadcast %84 : vector<1x64xf32> to vector<8x64xf32>
    %86 = arith.mulf %85, %83 : vector<8x64xf32>
    %87 = arith.addf %76, %86 : vector<8x64xf32>
    %cst_27 = arith.constant 5.000000e-01 : f32
    %88 = vector.broadcast %cst_27 : f32 to vector<8x64xf32>
    %89 = arith.mulf %88, %87 : vector<8x64xf32>
    %90 = math.tanh %89 : vector<8x64xf32>
    %cst_28 = arith.constant 1.000000e+00 : f32
    %91 = vector.broadcast %cst_28 : f32 to vector<8x64xf32>
    %92 = arith.addf %90, %91 : vector<8x64xf32>
    %cst_29 = arith.constant 5.000000e-01 : f32
    %93 = vector.broadcast %cst_29 : f32 to vector<8x64xf32>
    %94 = arith.mulf %93, %92 : vector<8x64xf32>
    %95 = arith.mulf %87, %94 : vector<8x64xf32>
    %c0_30 = arith.constant 0 : index
    %c0_31 = arith.constant 0 : index
    %96 = vector.load %arg7[%c0_30, %c0_31] : memref<64x384xbf16, #tpu.memory_space<vmem>>, vector<64x384xbf16>
    %97 = arith.truncf %95 : vector<8x64xf32> to vector<8x64xbf16>
    %cst_32 = arith.constant dense<0.000000e+00> : vector<8x384xf32>
    %98 = tpu.matmul %97, %96, %cst_32 {dimension_numbers = #tpu.dot_dimension_numbers<[1], [0], [0], [1], [0, 0, 1, 1], [], []>} : vector<8x64xbf16>, vector<64x384xbf16>, vector<8x384xf32> -> vector<8x384xf32>
    %99 = vector.extract_strided_slice %98 {offsets = [0, 0], sizes = [8, 2], strides = [1, 1]} : vector<8x384xf32> to vector<8x2xf32>
    %100 = vector.extract_strided_slice %98 {offsets = [0, 128], sizes = [8, 16], strides = [1, 1]} : vector<8x384xf32> to vector<8x16xf32>
    %101 = vector.extract_strided_slice %98 {offsets = [0, 256], sizes = [8, 16], strides = [1, 1]} : vector<8x384xf32> to vector<8x16xf32>
    %c0_33 = arith.constant 0 : index
    %c0_34 = arith.constant 0 : index
    %102 = vector.load %arg8[%c0_33, %c0_34] : memref<2x64xf32, #tpu.memory_space<vmem>>, vector<2x64xf32>
    %cst_35 = arith.constant dense<0.000000e+00> : vector<8x64xf32>
    %103 = tpu.matmul %99, %102, %cst_35 {dimension_numbers = #tpu.dot_dimension_numbers<[1], [0], [0], [1], [0, 0, 1, 1], [], []>} : vector<8x2xf32>, vector<2x64xf32>, vector<8x64xf32> -> vector<8x64xf32>
    %c0_36 = arith.constant 0 : index
    %c0_37 = arith.constant 0 : index
    %104 = vector.load %arg9[%c0_36, %c0_37] : memref<1x64xf32, #tpu.memory_space<vmem>>, vector<1x64xf32>
    %105 = vector.broadcast %104 : vector<1x64xf32> to vector<8x64xf32>
    %106 = arith.addf %103, %105 : vector<8x64xf32>
    %cst_38 = arith.constant 0.000000e+00 : f32
    %107 = vector.broadcast %cst_38 : f32 to vector<8x64xf32>
    %108 = arith.maximumf %106, %107 : vector<8x64xf32>
    %109 = math.absf %106 : vector<8x64xf32>
    %cst_39 = arith.constant 0.000000e+00 : f32
    %110 = vector.broadcast %cst_39 : f32 to vector<8x64xf32>
    %111 = arith.subf %110, %109 : vector<8x64xf32>
    %112 = math.exp %111 : vector<8x64xf32>
    %cst_40 = arith.constant 1.000000e+00 : f32
    %113 = vector.broadcast %cst_40 : f32 to vector<8x64xf32>
    %114 = arith.addf %113, %112 : vector<8x64xf32>
    %115 = math.log %114 : vector<8x64xf32>
    %116 = arith.addf %108, %115 : vector<8x64xf32>
    %117 = vector.shape_cast %116 : vector<8x64xf32> to vector<1x8x64xf32>
    %c0_41 = arith.constant 0 : index
    %c0_42 = arith.constant 0 : index
    %c0_43 = arith.constant 0 : index
    %118 = vector.load %arg20[%c0_41, %c0_42, %c0_43] : memref<1x8x64xf32, #tpu.memory_space<vmem>>, vector<1x8x64xf32>
    tpu.vector_store %arg20[%c0_41, %c0_42, %c0_43], %117 {strides = array<i32>} : memref<1x8x64xf32, #tpu.memory_space<vmem>>, vector<1x8x64xf32>,
    %119 = arith.mulf %116, %95 : vector<8x64xf32>
    %120 = vector.shape_cast %119 : vector<8x64xf32> to vector<1x8x64xf32>
    %c0_44 = arith.constant 0 : index
    %c0_45 = arith.constant 0 : index
    %c0_46 = arith.constant 0 : index
    %121 = vector.load %arg21[%c0_44, %c0_45, %c0_46] : memref<1x8x64xf32, #tpu.memory_space<vmem>>, vector<1x8x64xf32>
    tpu.vector_store %arg21[%c0_44, %c0_45, %c0_46], %120 {strides = array<i32>} : memref<1x8x64xf32, #tpu.memory_space<vmem>>, vector<1x8x64xf32>,
    %122 = vector.shape_cast %100 : vector<8x16xf32> to vector<1x8x16xf32>
    %c0_47 = arith.constant 0 : index
    %c0_48 = arith.constant 0 : index
    %c0_49 = arith.constant 0 : index
    %123 = vector.load %arg22[%c0_47, %c0_48, %c0_49] : memref<1x8x16xf32, #tpu.memory_space<vmem>>, vector<1x8x16xf32>
    tpu.vector_store %arg22[%c0_47, %c0_48, %c0_49], %122 {strides = array<i32>} : memref<1x8x16xf32, #tpu.memory_space<vmem>>, vector<1x8x16xf32>,
    %124 = vector.shape_cast %101 : vector<8x16xf32> to vector<1x8x16xf32>
    %c0_50 = arith.constant 0 : index
    %c0_51 = arith.constant 0 : index
    %c0_52 = arith.constant 0 : index
    %125 = vector.load %arg23[%c0_50, %c0_51, %c0_52] : memref<1x8x16xf32, #tpu.memory_space<vmem>>, vector<1x8x16xf32>
    tpu.vector_store %arg23[%c0_50, %c0_51, %c0_52], %124 {strides = array<i32>} : memref<1x8x16xf32, #tpu.memory_space<vmem>>, vector<1x8x16xf32>,
    %c0_53 = arith.constant 0 : index
    %c0_54 = arith.constant 0 : index
    %126 = vector.load %arg10[%c0_53, %c0_54] : memref<16x64xf32, #tpu.memory_space<vmem>>, vector<16x64xf32>
    %cst_55 = arith.constant 0.000000e+00 : f32
    %127 = vector.broadcast %cst_55 : f32 to vector<1x16x64xf32>
    %c0_i32_56 = arith.constant 0 : i32
    %c8_i32_57 = arith.constant 8 : i32
    %128 = arith.muli %c0_i32_56, %c8_i32_57 : i32
    %129 = tpu.assume_multiple %128, 8 : i32
    %c0_58 = arith.constant 0 : index
    %130 = arith.index_cast %129 : i32 to index
    %c0_59 = arith.constant 0 : index
    %131 = vector.load %arg20[%c0_58, %130, %c0_59] : memref<1x8x64xf32, #tpu.memory_space<vmem>>, vector<1x8x64xf32>
    %c0_60 = arith.constant 0 : index
    %132 = arith.index_cast %129 : i32 to index
    %c0_61 = arith.constant 0 : index
    %133 = vector.load %arg21[%c0_60, %132, %c0_61] : memref<1x8x64xf32, #tpu.memory_space<vmem>>, vector<1x8x64xf32>
    %c0_62 = arith.constant 0 : index
    %134 = arith.index_cast %129 : i32 to index
    %c0_63 = arith.constant 0 : index
    %135 = vector.load %arg22[%c0_62, %134, %c0_63] : memref<1x8x16xf32, #tpu.memory_space<vmem>>, vector<1x8x16xf32>
    %c0_64 = arith.constant 0 : index
    %136 = arith.index_cast %129 : i32 to index
    %c0_65 = arith.constant 0 : index
    %137 = vector.load %arg23[%c0_64, %136, %c0_65] : memref<1x8x16xf32, #tpu.memory_space<vmem>>, vector<1x8x16xf32>
    %138 = vector.shape_cast %131 : vector<1x8x64xf32> to vector<1x8x1x64xf32>
    %139 = vector.shape_cast %126 : vector<16x64xf32> to vector<1x1x16x64xf32>
    %140 = vector.broadcast %138 : vector<1x8x1x64xf32> to vector<1x8x16x64xf32>
    %141 = vector.broadcast %139 : vector<1x1x16x64xf32> to vector<1x8x16x64xf32>
    %142 = arith.mulf %140, %141 : vector<1x8x16x64xf32>
    %143 = math.exp %142 : vector<1x8x16x64xf32>
    %144 = vector.shape_cast %135 : vector<1x8x16xf32> to vector<1x8x16x1xf32>
    %145 = vector.shape_cast %133 : vector<1x8x64xf32> to vector<1x8x1x64xf32>
    %146 = vector.broadcast %144 : vector<1x8x16x1xf32> to vector<1x8x16x64xf32>
    %147 = vector.broadcast %145 : vector<1x8x1x64xf32> to vector<1x8x16x64xf32>
    %148 = arith.mulf %146, %147 : vector<1x8x16x64xf32>
    %149 = vector.extract_strided_slice %143 {offsets = [0, 0, 0, 0], sizes = [1, 1, 16, 64], strides = [1, 1, 1, 1]} : vector<1x8x16x64xf32> to vector<1x1x16x64xf32>
    %150 = vector.shape_cast %149 : vector<1x1x16x64xf32> to vector<1x16x64xf32>
    %151 = arith.mulf %150, %127 : vector<1x16x64xf32>
    %152 = vector.extract_strided_slice %148 {offsets = [0, 0, 0, 0], sizes = [1, 1, 16, 64], strides = [1, 1, 1, 1]} : vector<1x8x16x64xf32> to vector<1x1x16x64xf32>
    %153 = vector.shape_cast %152 : vector<1x1x16x64xf32> to vector<1x16x64xf32>
    %154 = arith.addf %151, %153 : vector<1x16x64xf32>
    %155 = vector.extract_strided_slice %137 {offsets = [0, 0, 0], sizes = [1, 1, 16], strides = [1, 1, 1]} : vector<1x8x16xf32> to vector<1x1x16xf32>
    %156 = vector.shape_cast %155 : vector<1x1x16xf32> to vector<1x16xf32>
    %157 = vector.shape_cast %156 : vector<1x16xf32> to vector<1x16x1xf32>
    %158 = vector.broadcast %157 : vector<1x16x1xf32> to vector<1x16x64xf32>
    %159 = arith.mulf %158, %154 : vector<1x16x64xf32>
    %cst_66 = arith.constant dense<0.000000e+00> : vector<1x64xf32>
    %160 = vector.multi_reduction <add>, %159, %cst_66 [1] : vector<1x16x64xf32> to vector<1x64xf32>
    %161 = vector.extract_strided_slice %143 {offsets = [0, 1, 0, 0], sizes = [1, 1, 16, 64], strides = [1, 1, 1, 1]} : vector<1x8x16x64xf32> to vector<1x1x16x64xf32>
    %162 = vector.shape_cast %161 : vector<1x1x16x64xf32> to vector<1x16x64xf32>
    %163 = arith.mulf %162, %154 : vector<1x16x64xf32>
    %164 = vector.extract_strided_slice %148 {offsets = [0, 1, 0, 0], sizes = [1, 1, 16, 64], strides = [1, 1, 1, 1]} : vector<1x8x16x64xf32> to vector<1x1x16x64xf32>
    %165 = vector.shape_cast %164 : vector<1x1x16x64xf32> to vector<1x16x64xf32>
    %166 = arith.addf %163, %165 : vector<1x16x64xf32>
    %167 = vector.extract_strided_slice %137 {offsets = [0, 1, 0], sizes = [1, 1, 16], strides = [1, 1, 1]} : vector<1x8x16xf32> to vector<1x1x16xf32>
    %168 = vector.shape_cast %167 : vector<1x1x16xf32> to vector<1x16xf32>
    %169 = vector.shape_cast %168 : vector<1x16xf32> to vector<1x16x1xf32>
    %170 = vector.broadcast %169 : vector<1x16x1xf32> to vector<1x16x64xf32>
    %171 = arith.mulf %170, %166 : vector<1x16x64xf32>
    %cst_67 = arith.constant dense<0.000000e+00> : vector<1x64xf32>
    %172 = vector.multi_reduction <add>, %171, %cst_67 [1] : vector<1x16x64xf32> to vector<1x64xf32>
    %173 = vector.extract_strided_slice %143 {offsets = [0, 2, 0, 0], sizes = [1, 1, 16, 64], strides = [1, 1, 1, 1]} : vector<1x8x16x64xf32> to vector<1x1x16x64xf32>
    %174 = vector.shape_cast %173 : vector<1x1x16x64xf32> to vector<1x16x64xf32>
    %175 = arith.mulf %174, %166 : vector<1x16x64xf32>
    %176 = vector.extract_strided_slice %148 {offsets = [0, 2, 0, 0], sizes = [1, 1, 16, 64], strides = [1, 1, 1, 1]} : vector<1x8x16x64xf32> to vector<1x1x16x64xf32>
    %177 = vector.shape_cast %176 : vector<1x1x16x64xf32> to vector<1x16x64xf32>
    %178 = arith.addf %175, %177 : vector<1x16x64xf32>
    %179 = vector.extract_strided_slice %137 {offsets = [0, 2, 0], sizes = [1, 1, 16], strides = [1, 1, 1]} : vector<1x8x16xf32> to vector<1x1x16xf32>
    %180 = vector.shape_cast %179 : vector<1x1x16xf32> to vector<1x16xf32>
    %181 = vector.shape_cast %180 : vector<1x16xf32> to vector<1x16x1xf32>
    %182 = vector.broadcast %181 : vector<1x16x1xf32> to vector<1x16x64xf32>
    %183 = arith.mulf %182, %178 : vector<1x16x64xf32>
    %cst_68 = arith.constant dense<0.000000e+00> : vector<1x64xf32>
    %184 = vector.multi_reduction <add>, %183, %cst_68 [1] : vector<1x16x64xf32> to vector<1x64xf32>
    %185 = vector.extract_strided_slice %143 {offsets = [0, 3, 0, 0], sizes = [1, 1, 16, 64], strides = [1, 1, 1, 1]} : vector<1x8x16x64xf32> to vector<1x1x16x64xf32>
    %186 = vector.shape_cast %185 : vector<1x1x16x64xf32> to vector<1x16x64xf32>
    %187 = arith.mulf %186, %178 : vector<1x16x64xf32>
    %188 = vector.extract_strided_slice %148 {offsets = [0, 3, 0, 0], sizes = [1, 1, 16, 64], strides = [1, 1, 1, 1]} : vector<1x8x16x64xf32> to vector<1x1x16x64xf32>
    %189 = vector.shape_cast %188 : vector<1x1x16x64xf32> to vector<1x16x64xf32>
    %190 = arith.addf %187, %189 : vector<1x16x64xf32>
    %191 = vector.extract_strided_slice %137 {offsets = [0, 3, 0], sizes = [1, 1, 16], strides = [1, 1, 1]} : vector<1x8x16xf32> to vector<1x1x16xf32>
    %192 = vector.shape_cast %191 : vector<1x1x16xf32> to vector<1x16xf32>
    %193 = vector.shape_cast %192 : vector<1x16xf32> to vector<1x16x1xf32>
    %194 = vector.broadcast %193 : vector<1x16x1xf32> to vector<1x16x64xf32>
    %195 = arith.mulf %194, %190 : vector<1x16x64xf32>
    %cst_69 = arith.constant dense<0.000000e+00> : vector<1x64xf32>
    %196 = vector.multi_reduction <add>, %195, %cst_69 [1] : vector<1x16x64xf32> to vector<1x64xf32>
    %197 = vector.extract_strided_slice %143 {offsets = [0, 4, 0, 0], sizes = [1, 1, 16, 64], strides = [1, 1, 1, 1]} : vector<1x8x16x64xf32> to vector<1x1x16x64xf32>
    %198 = vector.shape_cast %197 : vector<1x1x16x64xf32> to vector<1x16x64xf32>
    %199 = arith.mulf %198, %190 : vector<1x16x64xf32>
    %200 = vector.extract_strided_slice %148 {offsets = [0, 4, 0, 0], sizes = [1, 1, 16, 64], strides = [1, 1, 1, 1]} : vector<1x8x16x64xf32> to vector<1x1x16x64xf32>
    %201 = vector.shape_cast %200 : vector<1x1x16x64xf32> to vector<1x16x64xf32>
    %202 = arith.addf %199, %201 : vector<1x16x64xf32>
    %203 = vector.extract_strided_slice %137 {offsets = [0, 4, 0], sizes = [1, 1, 16], strides = [1, 1, 1]} : vector<1x8x16xf32> to vector<1x1x16xf32>
    %204 = vector.shape_cast %203 : vector<1x1x16xf32> to vector<1x16xf32>
    %205 = vector.shape_cast %204 : vector<1x16xf32> to vector<1x16x1xf32>
    %206 = vector.broadcast %205 : vector<1x16x1xf32> to vector<1x16x64xf32>
    %207 = arith.mulf %206, %202 : vector<1x16x64xf32>
    %cst_70 = arith.constant dense<0.000000e+00> : vector<1x64xf32>
    %208 = vector.multi_reduction <add>, %207, %cst_70 [1] : vector<1x16x64xf32> to vector<1x64xf32>
    %209 = vector.extract_strided_slice %143 {offsets = [0, 5, 0, 0], sizes = [1, 1, 16, 64], strides = [1, 1, 1, 1]} : vector<1x8x16x64xf32> to vector<1x1x16x64xf32>
    %210 = vector.shape_cast %209 : vector<1x1x16x64xf32> to vector<1x16x64xf32>
    %211 = arith.mulf %210, %202 : vector<1x16x64xf32>
    %212 = vector.extract_strided_slice %148 {offsets = [0, 5, 0, 0], sizes = [1, 1, 16, 64], strides = [1, 1, 1, 1]} : vector<1x8x16x64xf32> to vector<1x1x16x64xf32>
    %213 = vector.shape_cast %212 : vector<1x1x16x64xf32> to vector<1x16x64xf32>
    %214 = arith.addf %211, %213 : vector<1x16x64xf32>
    %215 = vector.extract_strided_slice %137 {offsets = [0, 5, 0], sizes = [1, 1, 16], strides = [1, 1, 1]} : vector<1x8x16xf32> to vector<1x1x16xf32>
    %216 = vector.shape_cast %215 : vector<1x1x16xf32> to vector<1x16xf32>
    %217 = vector.shape_cast %216 : vector<1x16xf32> to vector<1x16x1xf32>
    %218 = vector.broadcast %217 : vector<1x16x1xf32> to vector<1x16x64xf32>
    %219 = arith.mulf %218, %214 : vector<1x16x64xf32>
    %cst_71 = arith.constant dense<0.000000e+00> : vector<1x64xf32>
    %220 = vector.multi_reduction <add>, %219, %cst_71 [1] : vector<1x16x64xf32> to vector<1x64xf32>
    %221 = vector.extract_strided_slice %143 {offsets = [0, 6, 0, 0], sizes = [1, 1, 16, 64], strides = [1, 1, 1, 1]} : vector<1x8x16x64xf32> to vector<1x1x16x64xf32>
    %222 = vector.shape_cast %221 : vector<1x1x16x64xf32> to vector<1x16x64xf32>
    %223 = arith.mulf %222, %214 : vector<1x16x64xf32>
    %224 = vector.extract_strided_slice %148 {offsets = [0, 6, 0, 0], sizes = [1, 1, 16, 64], strides = [1, 1, 1, 1]} : vector<1x8x16x64xf32> to vector<1x1x16x64xf32>
    %225 = vector.shape_cast %224 : vector<1x1x16x64xf32> to vector<1x16x64xf32>
    %226 = arith.addf %223, %225 : vector<1x16x64xf32>
    %227 = vector.extract_strided_slice %137 {offsets = [0, 6, 0], sizes = [1, 1, 16], strides = [1, 1, 1]} : vector<1x8x16xf32> to vector<1x1x16xf32>
    %228 = vector.shape_cast %227 : vector<1x1x16xf32> to vector<1x16xf32>
    %229 = vector.shape_cast %228 : vector<1x16xf32> to vector<1x16x1xf32>
    %230 = vector.broadcast %229 : vector<1x16x1xf32> to vector<1x16x64xf32>
    %231 = arith.mulf %230, %226 : vector<1x16x64xf32>
    %cst_72 = arith.constant dense<0.000000e+00> : vector<1x64xf32>
    %232 = vector.multi_reduction <add>, %231, %cst_72 [1] : vector<1x16x64xf32> to vector<1x64xf32>
    %233 = vector.extract_strided_slice %143 {offsets = [0, 7, 0, 0], sizes = [1, 1, 16, 64], strides = [1, 1, 1, 1]} : vector<1x8x16x64xf32> to vector<1x1x16x64xf32>
    %234 = vector.shape_cast %233 : vector<1x1x16x64xf32> to vector<1x16x64xf32>
    %235 = arith.mulf %234, %226 : vector<1x16x64xf32>
    %236 = vector.extract_strided_slice %148 {offsets = [0, 7, 0, 0], sizes = [1, 1, 16, 64], strides = [1, 1, 1, 1]} : vector<1x8x16x64xf32> to vector<1x1x16x64xf32>
    %237 = vector.shape_cast %236 : vector<1x1x16x64xf32> to vector<1x16x64xf32>
    %238 = arith.addf %235, %237 : vector<1x16x64xf32>
    %239 = vector.extract_strided_slice %137 {offsets = [0, 7, 0], sizes = [1, 1, 16], strides = [1, 1, 1]} : vector<1x8x16xf32> to vector<1x1x16xf32>
    %240 = vector.shape_cast %239 : vector<1x1x16xf32> to vector<1x16xf32>
    %241 = vector.shape_cast %240 : vector<1x16xf32> to vector<1x16x1xf32>
    %242 = vector.broadcast %241 : vector<1x16x1xf32> to vector<1x16x64xf32>
    %243 = arith.mulf %242, %238 : vector<1x16x64xf32>
    %cst_73 = arith.constant dense<0.000000e+00> : vector<1x64xf32>
    %244 = vector.multi_reduction <add>, %243, %cst_73 [1] : vector<1x16x64xf32> to vector<1x64xf32>
    %245 = vector.shape_cast %160 : vector<1x64xf32> to vector<1x1x64xf32>
    %246 = vector.shape_cast %172 : vector<1x64xf32> to vector<1x1x64xf32>
    %247 = vector.shape_cast %184 : vector<1x64xf32> to vector<1x1x64xf32>
    %248 = vector.shape_cast %196 : vector<1x64xf32> to vector<1x1x64xf32>
    %249 = vector.shape_cast %208 : vector<1x64xf32> to vector<1x1x64xf32>
    %250 = vector.shape_cast %220 : vector<1x64xf32> to vector<1x1x64xf32>
    %251 = vector.shape_cast %232 : vector<1x64xf32> to vector<1x1x64xf32>
    %252 = vector.shape_cast %244 : vector<1x64xf32> to vector<1x1x64xf32>
    %253 = tpu.concatenate %245, %246, %247, %248, %249, %250, %251, %252 in 1 : vector<1x1x64xf32>, vector<1x1x64xf32>, vector<1x1x64xf32>, vector<1x1x64xf32>, vector<1x1x64xf32>, vector<1x1x64xf32>, vector<1x1x64xf32>, vector<1x1x64xf32> -> vector<1x8x64xf32>
    %c0_74 = arith.constant 0 : index
    %254 = arith.index_cast %129 : i32 to index
    %c0_75 = arith.constant 0 : index
    %255 = vector.load %arg24[%c0_74, %254, %c0_75] : memref<1x8x64xf32, #tpu.memory_space<vmem>>, vector<1x8x64xf32>
    tpu.vector_store %arg24[%c0_74, %254, %c0_75], %253 {strides = array<i32>} : memref<1x8x64xf32, #tpu.memory_space<vmem>>, vector<1x8x64xf32>,
    %c1_i32_76 = arith.constant 1 : i32
    %c0_77 = arith.constant 0 : index
    %c0_78 = arith.constant 0 : index
    %c0_79 = arith.constant 0 : index
    %256 = vector.load %arg24[%c0_77, %c0_78, %c0_79] : memref<1x8x64xf32, #tpu.memory_space<vmem>>, vector<1x8x64xf32>
    %257 = vector.shape_cast %256 : vector<1x8x64xf32> to vector<8x64xf32>
    %c0_80 = arith.constant 0 : index
    %c0_81 = arith.constant 0 : index
    %258 = vector.load %arg11[%c0_80, %c0_81] : memref<1x64xf32, #tpu.memory_space<vmem>>, vector<1x64xf32>
    %259 = vector.broadcast %258 : vector<1x64xf32> to vector<8x64xf32>
    %260 = arith.mulf %95, %259 : vector<8x64xf32>
    %261 = arith.addf %257, %260 : vector<8x64xf32>
    %cst_82 = arith.constant 5.000000e-01 : f32
    %262 = vector.broadcast %cst_82 : f32 to vector<8x64xf32>
    %263 = arith.mulf %262, %30 : vector<8x64xf32>
    %264 = math.tanh %263 : vector<8x64xf32>
    %cst_83 = arith.constant 1.000000e+00 : f32
    %265 = vector.broadcast %cst_83 : f32 to vector<8x64xf32>
    %266 = arith.addf %264, %265 : vector<8x64xf32>
    %cst_84 = arith.constant 5.000000e-01 : f32
    %267 = vector.broadcast %cst_84 : f32 to vector<8x64xf32>
    %268 = arith.mulf %267, %266 : vector<8x64xf32>
    %269 = arith.mulf %30, %268 : vector<8x64xf32>
    %270 = arith.mulf %261, %269 : vector<8x64xf32>
    %c0_85 = arith.constant 0 : index
    %c0_86 = arith.constant 0 : index
    %271 = vector.load %arg12[%c0_85, %c0_86] : memref<64x32xbf16, #tpu.memory_space<vmem>>, vector<64x32xbf16>
    %272 = arith.truncf %270 : vector<8x64xf32> to vector<8x64xbf16>
    %cst_87 = arith.constant dense<0.000000e+00> : vector<8x32xf32>
    %273 = tpu.matmul %272, %271, %cst_87 {dimension_numbers = #tpu.dot_dimension_numbers<[1], [0], [0], [1], [0, 0, 1, 1], [], []>} : vector<8x64xbf16>, vector<64x32xbf16>, vector<8x32xf32> -> vector<8x32xf32>
    %274 = arith.addf %1, %273 : vector<8x32xf32>
    %c0_88 = arith.constant 0 : index
    %c0_89 = arith.constant 0 : index
    %275 = vector.load %arg15[%c0_88, %c0_89] : memref<32x128xbf16, #tpu.memory_space<vmem>>, vector<32x128xbf16>
    %c0_90 = arith.constant 0 : index
    %c0_91 = arith.constant 0 : index
    %276 = vector.load %arg17[%c0_90, %c0_91] : memref<128x32xbf16, #tpu.memory_space<vmem>>, vector<128x32xbf16>
    %c0_92 = arith.constant 0 : index
    %c0_93 = arith.constant 0 : index
    %277 = vector.load %arg13[%c0_92, %c0_93] : memref<1x32xf32, #tpu.memory_space<vmem>>, vector<1x32xf32>
    %c0_94 = arith.constant 0 : index
    %c0_95 = arith.constant 0 : index
    %278 = vector.load %arg14[%c0_94, %c0_95] : memref<1x32xf32, #tpu.memory_space<vmem>>, vector<1x32xf32>
    %cst_96 = arith.constant dense<0.000000e+00> : vector<8xf32>
    %279 = vector.multi_reduction <add>, %274, %cst_96 [1] : vector<8x32xf32> to vector<8xf32>
    %280 = vector.shape_cast %279 : vector<8xf32> to vector<8x1xf32>
    %cst_97 = arith.constant 3.200000e+01 : f32
    %281 = vector.broadcast %cst_97 : f32 to vector<8x1xf32>
    %282 = arith.divf %280, %281 : vector<8x1xf32>
    %283 = vector.broadcast %282 : vector<8x1xf32> to vector<8x32xf32>
    %284 = arith.subf %274, %283 : vector<8x32xf32>
    %285 = arith.mulf %284, %284 : vector<8x32xf32>
    %cst_98 = arith.constant dense<0.000000e+00> : vector<8xf32>
    %286 = vector.multi_reduction <add>, %285, %cst_98 [1] : vector<8x32xf32> to vector<8xf32>
    %287 = vector.shape_cast %286 : vector<8xf32> to vector<8x1xf32>
    %cst_99 = arith.constant 3.200000e+01 : f32
    %288 = vector.broadcast %cst_99 : f32 to vector<8x1xf32>
    %289 = arith.divf %287, %288 : vector<8x1xf32>
    %290 = vector.broadcast %282 : vector<8x1xf32> to vector<8x32xf32>
    %291 = arith.subf %274, %290 : vector<8x32xf32>
    %cst_100 = arith.constant 9.99999974E-6 : f32
    %292 = vector.broadcast %cst_100 : f32 to vector<8x1xf32>
    %293 = arith.addf %289, %292 : vector<8x1xf32>
    %294 = math.rsqrt %293 : vector<8x1xf32>
    %295 = vector.broadcast %294 : vector<8x1xf32> to vector<8x32xf32>
    %296 = arith.mulf %291, %295 : vector<8x32xf32>
    %297 = vector.broadcast %277 : vector<1x32xf32> to vector<8x32xf32>
    %298 = arith.mulf %296, %297 : vector<8x32xf32>
    %299 = vector.broadcast %278 : vector<1x32xf32> to vector<8x32xf32>
    %300 = arith.addf %298, %299 : vector<8x32xf32>
    %301 = arith.truncf %300 : vector<8x32xf32> to vector<8x32xbf16>
    %cst_101 = arith.constant dense<0.000000e+00> : vector<8x128xf32>
    %302 = tpu.matmul %301, %275, %cst_101 {dimension_numbers = #tpu.dot_dimension_numbers<[1], [0], [0], [1], [0, 0, 1, 1], [], []>} : vector<8x32xbf16>, vector<32x128xbf16>, vector<8x128xf32> -> vector<8x128xf32>
    %c0_102 = arith.constant 0 : index
    %c0_103 = arith.constant 0 : index
    %303 = vector.load %arg16[%c0_102, %c0_103] : memref<1x128xf32, #tpu.memory_space<vmem>>, vector<1x128xf32>
    %304 = vector.broadcast %303 : vector<1x128xf32> to vector<8x128xf32>
    %305 = arith.addf %302, %304 : vector<8x128xf32>
    %cst_104 = arith.constant 0.000000e+00 : f32
    %306 = vector.broadcast %cst_104 : f32 to vector<8x128xf32>
    %307 = arith.maximumf %305, %306 : vector<8x128xf32>
    %308 = arith.truncf %307 : vector<8x128xf32> to vector<8x128xbf16>
    %cst_105 = arith.constant dense<0.000000e+00> : vector<8x32xf32>
    %309 = tpu.matmul %308, %276, %cst_105 {dimension_numbers = #tpu.dot_dimension_numbers<[1], [0], [0], [1], [0, 0, 1, 1], [], []>} : vector<8x128xbf16>, vector<128x32xbf16>, vector<8x32xf32> -> vector<8x32xf32>
    %c0_106 = arith.constant 0 : index
    %c0_107 = arith.constant 0 : index
    %310 = vector.load %arg18[%c0_106, %c0_107] : memref<1x32xf32, #tpu.memory_space<vmem>>, vector<1x32xf32>
    %311 = vector.broadcast %310 : vector<1x32xf32> to vector<8x32xf32>
    %312 = arith.addf %309, %311 : vector<8x32xf32>
    %313 = arith.addf %274, %312 : vector<8x32xf32>
    %314 = vector.shape_cast %313 : vector<8x32xf32> to vector<1x8x32xf32>
    %c0_108 = arith.constant 0 : index
    %c0_109 = arith.constant 0 : index
    %c0_110 = arith.constant 0 : index
    %315 = vector.load %arg19[%c0_108, %c0_109, %c0_110] : memref<1x8x32xf32, #tpu.memory_space<vmem>>, vector<1x8x32xf32>
    tpu.vector_store %arg19[%c0_108, %c0_109, %c0_110], %314 {strides = array<i32>} : memref<1x8x32xf32, #tpu.memory_space<vmem>>, vector<1x8x32xf32>,
    return
  }
  func.func @transform_0(%arg0: i32) -> (i32, i32, i32) {
    %c0_i32 = arith.constant 0 : i32
    %c0_i32_0 = arith.constant 0 : i32
    %c0_i32_1 = arith.constant 0 : i32
    return %arg0, %c0_i32, %c0_i32_0 : i32, i32, i32
  }
  func.func @transform_1(%arg0: i32) -> (i32, i32) {
    %c0_i32 = arith.constant 0 : i32
    %c0_i32_0 = arith.constant 0 : i32
    %c0_i32_1 = arith.constant 0 : i32
    return %c0_i32, %c0_i32_0 : i32, i32
  }
  func.func @transform_2(%arg0: i32) -> (i32, i32) {
    %c0_i32 = arith.constant 0 : i32
    %c0_i32_0 = arith.constant 0 : i32
    %c0_i32_1 = arith.constant 0 : i32
    return %c0_i32, %c0_i32_0 : i32, i32
  }
  func.func @transform_3(%arg0: i32) -> (i32, i32) {
    %c0_i32 = arith.constant 0 : i32
    %c0_i32_0 = arith.constant 0 : i32
    %c0_i32_1 = arith.constant 0 : i32
    return %c0_i32, %c0_i32_0 : i32, i32
  }
  func.func @transform_4(%arg0: i32) -> (i32, i32) {
    %c0_i32 = arith.constant 0 : i32
    %c0_i32_0 = arith.constant 0 : i32
    %c0_i32_1 = arith.constant 0 : i32
    return %c0_i32, %c0_i32_0 : i32, i32
  }
  func.func @transform_5(%arg0: i32) -> (i32, i32) {
    %c0_i32 = arith.constant 0 : i32
    %c0_i32_0 = arith.constant 0 : i32
    %c0_i32_1 = arith.constant 0 : i32
    return %c0_i32, %c0_i32_0 : i32, i32
  }
  func.func @transform_6(%arg0: i32) -> (i32, i32) {
    %c0_i32 = arith.constant 0 : i32
    %c0_i32_0 = arith.constant 0 : i32
    %c0_i32_1 = arith.constant 0 : i32
    return %c0_i32, %c0_i32_0 : i32, i32
  }
  func.func @transform_7(%arg0: i32) -> (i32, i32) {
    %c0_i32 = arith.constant 0 : i32
    %c0_i32_0 = arith.constant 0 : i32
    %c0_i32_1 = arith.constant 0 : i32
    return %c0_i32, %c0_i32_0 : i32, i32
  }
  func.func @transform_8(%arg0: i32) -> (i32, i32) {
    %c0_i32 = arith.constant 0 : i32
    %c0_i32_0 = arith.constant 0 : i32
    %c0_i32_1 = arith.constant 0 : i32
    return %c0_i32, %c0_i32_0 : i32, i32
  }
  func.func @transform_9(%arg0: i32) -> (i32, i32) {
    %c0_i32 = arith.constant 0 : i32
    %c0_i32_0 = arith.constant 0 : i32
    %c0_i32_1 = arith.constant 0 : i32
    return %c0_i32, %c0_i32_0 : i32, i32
  }
  func.func @transform_10(%arg0: i32) -> (i32, i32) {
    %c0_i32 = arith.constant 0 : i32
    %c0_i32_0 = arith.constant 0 : i32
    %c0_i32_1 = arith.constant 0 : i32
    return %c0_i32, %c0_i32_0 : i32, i32
  }
  func.func @transform_11(%arg0: i32) -> (i32, i32) {
    %c0_i32 = arith.constant 0 : i32
    %c0_i32_0 = arith.constant 0 : i32
    %c0_i32_1 = arith.constant 0 : i32
    return %c0_i32, %c0_i32_0 : i32, i32
  }
  func.func @transform_12(%arg0: i32) -> (i32, i32) {
    %c0_i32 = arith.constant 0 : i32
    %c0_i32_0 = arith.constant 0 : i32
    %c0_i32_1 = arith.constant 0 : i32
    return %c0_i32, %c0_i32_0 : i32, i32
  }
  func.func @transform_13(%arg0: i32) -> (i32, i32) {
    %c0_i32 = arith.constant 0 : i32
    %c0_i32_0 = arith.constant 0 : i32
    %c0_i32_1 = arith.constant 0 : i32
    return %c0_i32, %c0_i32_0 : i32, i32
  }
  func.func @transform_14(%arg0: i32) -> (i32, i32) {
    %c0_i32 = arith.constant 0 : i32
    %c0_i32_0 = arith.constant 0 : i32
    %c0_i32_1 = arith.constant 0 : i32
    return %c0_i32, %c0_i32_0 : i32, i32
  }
  func.func @transform_15(%arg0: i32) -> (i32, i32) {
    %c0_i32 = arith.constant 0 : i32
    %c0_i32_0 = arith.constant 0 : i32
    %c0_i32_1 = arith.constant 0 : i32
    return %c0_i32, %c0_i32_0 : i32, i32
  }
  func.func @transform_16(%arg0: i32) -> (i32, i32) {
    %c0_i32 = arith.constant 0 : i32
    %c0_i32_0 = arith.constant 0 : i32
    %c0_i32_1 = arith.constant 0 : i32
    return %c0_i32, %c0_i32_0 : i32, i32
  }
  func.func @transform_17(%arg0: i32) -> (i32, i32) {
    %c0_i32 = arith.constant 0 : i32
    %c0_i32_0 = arith.constant 0 : i32
    %c0_i32_1 = arith.constant 0 : i32
    return %c0_i32, %c0_i32_0 : i32, i32
  }
  func.func @transform_18(%arg0: i32) -> (i32, i32, i32) {
    %c0_i32 = arith.constant 0 : i32
    %c0_i32_0 = arith.constant 0 : i32
    %c0_i32_1 = arith.constant 0 : i32
    return %arg0, %c0_i32, %c0_i32_0 : i32, i32, i32
  }
}

</mosaic_0001>

<bundles_post_ra>
// kernel: tpu_custom_call.1
= control target key start
LH: loop header
LB: loop body
LE: loop exit
PB: predicated region body
PF: predicated region fallthrough
CT: control target
= control target key end

     0   :  { %s3743_s0 = inlined_call_operand.hbm [shape: f32[2,8,32], index: 0, kind: input, shape index: {}]   ;;  %s3744_s1 = inlined_call_operand.vmem [shape: f32[1,32], index: 1, kind: input, shape index: {}]   ;;  %s3745_s2 = inlined_call_operand.hbm [shape: f32[1,32], index: 2, kind: input, shape index: {}]   ;;  %s3746_s3 = inlined_call_operand.vmem [shape: bf16[32,256], index: 3, kind: input, shape index: {}]   ;;  %s3747_s4 = inlined_call_operand.hbm [shape: f32[4,64], index: 4, kind: input, shape index: {}]   ;;  %s3748_s5 = inlined_call_operand.hbm [shape: f32[1,64], index: 5, kind: input, shape index: {}]   ;;  %s3749_s6 = inlined_call_operand.vmem [shape: bf16[64,384], index: 6, kind: input, shape index: {}]   ;;  %s3750_s7 = inlined_call_operand.hbm [shape: f32[2,64], index: 7, kind: input, shape index: {}]   ;;  %s3751_s8 = inlined_call_operand.hbm [shape: f32[1,64], index: 8, kind: input, shape index: {}]   ;;  %s3752_s9 = inlined_call_operand.hbm [shape: f32[16,64], index: 9, kind: input, shape index: {}]   ;;  %s3753_s10 = inlined_call_operand.hbm [shape: f32[1,64], index: 10, kind: input, shape index: {}]   ;;  %s3754_s11 = inlined_call_operand.vmem [shape: bf16[64,32], index: 11, kind: input, shape index: {}]   ;;  %s3755_s12 = inlined_call_operand.hbm [shape: f32[1,32], index: 12, kind: input, shape index: {}]   ;;  %s3756_s13 = inlined_call_operand.hbm [shape: f32[1,32], index: 13, kind: input, shape index: {}]   ;;  %s3757_s14 = inlined_call_operand.vmem [shape: bf16[32,128], index: 14, kind: input, shape index: {}]   ;;  %s3758_s15 = inlined_call_operand.vmem [shape: f32[1,128], index: 15, kind: input, shape index: {}]   ;;  %s3759_s16 = inlined_call_operand.vmem [shape: bf16[128,32], index: 16, kind: input, shape index: {}]   ;;  %s3760_s17 = inlined_call_operand.vmem [shape: f32[1,32], index: 17, kind: input, shape index: {}]   ;;  %s3761_s18 = inlined_call_operand.hbm [shape: f32[2,8,32], index: 18, kind: output, shape index: {}]  }
   0x1   :  { %3773 = sst [smem:[#allocation32_spill]] %s3743_s0 }
   0x2   :  { %3774 = sst [smem:[#allocation33_spill]] %s3744_s1 }
   0x3   :  { %3775 = sst [smem:[#allocation34_spill]] %s3745_s2 }
   0x4   :  { %3776 = sst [smem:[#allocation35_spill]] %s3746_s3 }
   0x5   :  { %3777 = sst [smem:[#allocation36_spill]] %s3747_s4 }
   0x6   :  { %3778 = sst [smem:[#allocation37_spill]] %s3748_s5 }
   0x7   :  { %3779 = sst [smem:[#allocation38_spill]] %s3749_s6 }
   0x8   :  { %3780 = sst [smem:[#allocation39_spill]] %s3750_s7 }
   0x9   :  { %3781 = sst [smem:[#allocation40_spill]] %s3754_s11 }
   0xa   :  { %3782 = sst [smem:[#allocation41_spill]] %s3757_s14 }
   0xb   :  { %3783 = sst [smem:[#allocation42_spill]] %s3758_s15 }
   0xc   :  { %3784 = sst [smem:[#allocation43_spill]] %s3759_s16 }
   0xd   :  { %3785 = sst [smem:[#allocation44_spill]] %s3760_s17 }
   0xe   :  { %3786 = sst [smem:[#allocation45_spill]] %s3761_s18 }
   0xf   :  { %23 = vsyncpa [#allocation8], 0 }
  0x10   :  { %25 = vsyncpa [#allocation8 + $0x1], 0 }
  0x11   :  { %26 = vsyncpa [#allocation11], 0 }
  0x12   :  { %27 = vsyncpa [#allocation14], 0 }
  0x13   :  { %28 = vsyncpa [#allocation17], 0 }
  0x14   :  { %29 = vsyncpa [#allocation20], 0 }
  0x15   :  { %30 = vsyncpa [#allocation23], 0 }
  0x16   :  { %31 = vsyncpa [#allocation9], 0 }
  0x17   :  { %33 = vsyncpa [#allocation9 + $0x1], 0  ;;  %s3040_s27 = smov 0   ;;  %s3042_s28 = smov 0  }
  0x18   :  { %s3044_s29 = smov 0   ;;  %s3046_s30 = smov 0  }
  0x19 LB: > { %s2928_s0 = smov [#allocation10]   ;;  %s3061_s1 = sadd.s32 4294967295, %s2926_s30   ;;  %s2926_s30 = sphi %s3046_s30, %s3826_s30   ;;  %s2922_s29 = sphi %s3044_s29, %s3825_s29   ;;  %s2918_s28 = sphi %s3042_s28, %s3824_s28   ;;  %s2914_s27 = sphi %s3040_s27, %s3823_s27  }
  0x1a   : > { %s469_s19 = sshll.u32 %s2928_s0, 4  ;;  %p2176_p0 = scmp.ge.s32.totalorder %s2926_s30, 1  ;;  %s3066_s19 = int_to_ptr.vmem [resolvable:$true] %s469_s19 }
  0x1b   : > { %p3769_p1 = scmp.eq.s32.totalorder %s3061_s1, 0  ;;  %p453_p2 = scmp.lt.s32.totalorder %s2926_s30, 3 }
  0x1c   : > { %s2929_s21 = smov [#allocation13]   ;;  %s2930_s2 = smov [#allocation16]  }
  0x1d   : > { %p3068_p3 = pnand %p2176_p0, %p453_p2  ;;  %s494_s22 = sshll.u32 %s2929_s21, 4  ;;  %s3075_s22 = int_to_ptr.vmem [resolvable:$true] %s494_s22 }
  0x1e   : > { %s519_s23 = sshll.u32 %s2930_s2, 4  ;;  %s2931_s25 = smov [#allocation19]   ;;  %s3083_s23 = int_to_ptr.vmem [resolvable:$true] %s519_s23 }
  0x1f   : > { %s3787_s20 = scalar_select %p3068_p3, 1, 0 }
  0x20   : > { %p2372_p5 = pneg %p3068_p3  ;;  %s3085_s26 = sshll.u32 %s2931_s25, 4  ;;  %s544_s26 = int_to_ptr.vmem [resolvable:$true] %s3085_s26 }
  0x21   : > { %s3789_s17 = sld [smem:[#allocation34_spill]] }
  0x22   : > { %p3079_p6 = pnand %p2372_p5, %p3769_p1 }
  0x24   : > { %p3095_p8 = pneg %p3079_p6 }
  0x27   : > { %s2558_s15 = scalar_lea.hbm %s3789_s17, 16 }
  0x28   : > { %p2559_p7 = scmp.ne.s32.totalorder %s3789_s17, %s2558_s15  ;;  %p2565_p11 = scmp.lt.u32.totalorder %s2558_s15, %s3789_s17 }
  0x2a   : > { %p2561_p9 = pnand %p3095_p8, %p2559_p7 }
  0x2c   : > { %p2562_p10 = pneg %p2561_p9 }
  0x2e   : > { %p2567_p12 = pnand %p2565_p11, %p2562_p10 }
  0x30   : > { %2570 = shalt.err (!%p2567_p12)
}
  0x31   : > { %s2571_s16 = scalar_lea.vmem %s3066_s19, 16  ;;  %s2578_s18 = scalar_lea.vmem %s3066_s19, 32 }
  0x32   : > { %p2572_p13 = scmp.ne.s32.totalorder %s3066_s19, %s2571_s16  ;;  %p2579_p5 = scmp.lt.s32.totalorder %s3066_s19, %s3066_s19 }
  0x33   : > { %p2580_p7 = scmp.lt.s32.totalorder %s2578_s18, %s2571_s16 }
  0x34   : > { %p2574_p0 = pnand %p2572_p13, %p3095_p8 }
  0x35   : > { %p2581_p9 = por %p2580_p7, %p2579_p5 }
  0x36   : > { %p2575_p2 = pneg %p2574_p0 }
  0x38   : > { %p2582_p4 = pnand %p2581_p9, %p2575_p2 }
  0x3a   : > { %2585 = shalt.err (!%p2582_p4)
}
  0x3b   : > { %2375 = dma.hbm_to_vmem [thread:$0]  (!%p3079_p6), %s3789_s17, 16, %s3066_s19, [#allocation11]  }
  0x3c   : > { %s3791_s5 = sld [smem:[#allocation37_spill]] }
  0x42   : > { %s2586_s25 = scalar_lea.hbm %s3791_s5, 16 }
  0x43   : > { %p2587_p10 = scmp.ne.s32.totalorder %s3791_s5, %s2586_s25  ;;  %p2593_p4 = scmp.lt.u32.totalorder %s2586_s25, %s3791_s5 }
  0x45   : > { %p2589_p11 = pnand %p2587_p10, %p3095_p8 }
  0x47   : > { %p2590_p12 = pneg %p2589_p11 }
  0x49   : > { %p2595_p13 = pnand %p2593_p4, %p2590_p12 }
  0x4b   : > { %2598 = shalt.err (!%p2595_p13)
}
  0x4c   : > { %s2599_s19 = scalar_lea.vmem %s3075_s22, 16  ;;  %s2606_s6 = scalar_lea.vmem %s3075_s22, 32 }
  0x4d   : > { %p2600_p0 = scmp.ne.s32.totalorder %s3075_s22, %s2599_s19  ;;  %p2607_p7 = scmp.lt.s32.totalorder %s3075_s22, %s3075_s22 }
  0x4e   : > { %p2608_p9 = scmp.lt.s32.totalorder %s2606_s6, %s2599_s19 }
  0x4f   : > { %p2602_p2 = pnand %p2600_p0, %p3095_p8 }
  0x50   : > { %p2609_p10 = por %p2608_p9, %p2607_p7 }
  0x51   : > { %p2603_p5 = pneg %p2602_p2 }
  0x53   : > { %p2610_p11 = pnand %p2609_p10, %p2603_p5 }
  0x55   : > { %2613 = shalt.err (!%p2610_p11)
}
  0x56   : > { %2381 = dma.hbm_to_vmem [thread:$0]  (!%p3079_p6), %s3791_s5, 16, %s3075_s22, [#allocation14]  }
  0x57   : > { %s2614_s21 = scalar_lea.hbm %s3751_s8, 16 }
  0x58   : > { %p2615_p12 = scmp.ne.s32.totalorder %s3751_s8, %s2614_s21  ;;  %p2621_p0 = scmp.lt.u32.totalorder %s2614_s21, %s3751_s8 }
  0x5a   : > { %p2617_p4 = pnand %p2615_p12, %p3095_p8 }
  0x5c   : > { %p2618_p13 = pneg %p2617_p4 }
  0x5e   : > { %p2623_p2 = pnand %p2621_p0, %p2618_p13 }
  0x60   : > { %2626 = shalt.err (!%p2623_p2)
}
  0x61   : > { %s2627_s22 = scalar_lea.vmem %s3083_s23, 16  ;;  %s2634_s6 = scalar_lea.vmem %s3083_s23, 32 }
  0x62   : > { %p2628_p5 = scmp.ne.s32.totalorder %s3083_s23, %s2627_s22  ;;  %p2635_p10 = scmp.lt.s32.totalorder %s3083_s23, %s3083_s23 }
  0x63   : > { %p2636_p11 = scmp.lt.s32.totalorder %s2634_s6, %s2627_s22 }
  0x64   : > { %p2630_p7 = pnand %p2628_p5, %p3095_p8 }
  0x65   : > { %p2637_p12 = por %p2636_p11, %p2635_p10 }
  0x66   : > { %p2631_p9 = pneg %p2630_p7 }
  0x68   : > { %p2638_p4 = pnand %p2637_p12, %p2631_p9 }
  0x6a   : > { %2641 = shalt.err (!%p2638_p4)
}
  0x6b   : > { %2387 = dma.hbm_to_vmem [thread:$0]  (!%p3079_p6), %s3751_s8, 16, %s3083_s23, [#allocation17]  }
  0x6c   : > { %s2932_s15 = smov [#allocation12]   ;;  %s2642_s16 = scalar_lea.hbm %s3753_s10, 16 }
  0x6d   : > { %s483_s0 = sshll.u32 %s2932_s15, 4  ;;  %p2643_p13 = scmp.ne.s32.totalorder %s3753_s10, %s2642_s16  ;;  %s484_s0 = int_to_ptr.vmem [resolvable:$true] %s483_s0 }
  0x6e   : > { %p2649_p5 = scmp.lt.u32.totalorder %s2642_s16, %s3753_s10 }
  0x6f   : > { %p2645_p0 = pnand %p2643_p13, %p3095_p8 }
  0x71   : > { %p2646_p2 = pneg %p2645_p0 }
  0x73   : > { %p2651_p7 = pnand %p2649_p5, %p2646_p2 }
  0x75   : > { %2654 = shalt.err (!%p2651_p7)
}
  0x76   : > { %s2655_s23 = scalar_lea.vmem %s544_s26, 16  ;;  %s2662_s11 = scalar_lea.vmem %s544_s26, 32 }
  0x77   : > { %p2656_p9 = scmp.ne.s32.totalorder %s544_s26, %s2655_s23  ;;  %p2663_p12 = scmp.lt.s32.totalorder %s544_s26, %s544_s26 }
  0x78   : > { %p2664_p4 = scmp.lt.s32.totalorder %s2662_s11, %s2655_s23 }
  0x79   : > { %p2658_p10 = pnand %p2656_p9, %p3095_p8 }
  0x7a   : > { %p2665_p1 = por %p2664_p4, %p2663_p12 }
  0x7b   : > { %p2659_p11 = pneg %p2658_p10 }
  0x7d   : > { %p2666_p3 = pnand %p2665_p1, %p2659_p11 }
  0x7f   : > { %2669 = shalt.err (!%p2666_p3)
}
  0x80   : > { %2393 = dma.hbm_to_vmem [thread:$0]  (!%p3079_p6), %s3753_s10, 16, %s544_s26, [#allocation20]  }
  0x81   : > { %s3792_s4 = sld [smem:[#allocation36_spill]] }
  0x87   : > { %s2670_s16 = scalar_lea.hbm %s3792_s4, 64 }
  0x88   : > { %p2671_p13 = scmp.ne.s32.totalorder %s3792_s4, %s2670_s16  ;;  %p2677_p3 = scmp.lt.u32.totalorder %s2670_s16, %s3792_s4 }
  0x8a   : > { %p2673_p0 = pnand %p2671_p13, %p3095_p8 }
  0x8c   : > { %p2674_p1 = pneg %p2673_p0 }
  0x8e   : > { %p2679_p2 = pnand %p2677_p3, %p2674_p1 }
  0x90   : > { %2682 = shalt.err (!%p2679_p2)
}
  0x91   : > { %s2683_s23 = scalar_lea.vmem %s484_s0, 64  ;;  %p2691_p10 = scmp.lt.s32.totalorder %s484_s0, %s484_s0 }
  0x92   : > { %p2684_p5 = scmp.ne.s32.totalorder %s484_s0, %s2683_s23  ;;  %p2692_p11 = scmp.lt.s32.totalorder %s2683_s23, %s2683_s23 }
  0x94   : > { %p2686_p7 = pnand %p2684_p5, %p3095_p8  ;;  %p2693_p12 = por %p2692_p11, %p2691_p10 }
  0x96   : > { %p2687_p9 = pneg %p2686_p7 }
  0x98   : > { %p2694_p4 = pnand %p2693_p12, %p2687_p9 }
  0x9a   : > { %2697 = shalt.err (!%p2694_p4)
}
  0x9b   : > { %2378 = dma.hbm_to_vmem [thread:$0]  (!%p3079_p6), %s3792_s4, 64, %s484_s0, [#allocation11]  }
  0x9c   : > { %s2933_s14 = smov [#allocation15]   ;;  %s2934_s21 = smov [#allocation18]  }
  0x9d   : > { %s508_s15 = sshll.u32 %s2933_s14, 4  ;;  %s529_s25 = sshll.u32 %s2934_s21, 4  ;;  %s509_s15 = int_to_ptr.vmem [resolvable:$true] %s508_s15  ;;  %s530_s25 = int_to_ptr.vmem [resolvable:$true] %s529_s25 }
  0x9e   : > { %s3793_s7 = sld [smem:[#allocation39_spill]] }
  0xa4   : > { %s2698_s19 = scalar_lea.hbm %s3793_s7, 32 }
  0xa5   : > { %p2699_p13 = scmp.ne.s32.totalorder %s3793_s7, %s2698_s19  ;;  %p2705_p3 = scmp.lt.u32.totalorder %s2698_s19, %s3793_s7 }
  0xa7   : > { %p2701_p0 = pnand %p2699_p13, %p3095_p8 }
  0xa9   : > { %p2702_p1 = pneg %p2701_p0 }
  0xab   : > { %p2707_p2 = pnand %p2705_p3, %p2702_p1 }
  0xad   : > { %2710 = shalt.err (!%p2707_p2)
}
  0xae   : > { %s2711_s0 = scalar_lea.vmem %s509_s15, 32  ;;  %p2719_p10 = scmp.lt.s32.totalorder %s509_s15, %s509_s15 }
  0xaf   : > { %p2712_p5 = scmp.ne.s32.totalorder %s509_s15, %s2711_s0  ;;  %p2720_p11 = scmp.lt.s32.totalorder %s2711_s0, %s2711_s0 }
  0xb1   : > { %p2714_p7 = pnand %p2712_p5, %p3095_p8  ;;  %p2721_p12 = por %p2720_p11, %p2719_p10 }
  0xb3   : > { %p2715_p9 = pneg %p2714_p7 }
  0xb5   : > { %p2722_p4 = pnand %p2721_p12, %p2715_p9 }
  0xb7   : > { %2725 = shalt.err (!%p2722_p4)
}
  0xb8   : > { %2384 = dma.hbm_to_vmem [thread:$0]  (!%p3079_p6), %s3793_s7, 32, %s509_s15, [#allocation14]  }
  0xb9   : > { %s2726_s18 = scalar_lea.hbm %s3752_s9, 256 }
  0xba   : > { %p2727_p13 = scmp.ne.s32.totalorder %s3752_s9, %s2726_s18  ;;  %p2733_p3 = scmp.lt.u32.totalorder %s2726_s18, %s3752_s9 }
  0xbc   : > { %p2729_p0 = pnand %p2727_p13, %p3095_p8 }
  0xbe   : > { %p2730_p1 = pneg %p2729_p0 }
  0xc0   : > { %p2735_p2 = pnand %p2733_p3, %p2730_p1 }
  0xc2   : > { %2738 = shalt.err (!%p2735_p2)
}
  0xc3   : > { %s2739_s26 = scalar_lea.vmem %s530_s25, 256  ;;  %p2747_p10 = scmp.lt.s32.totalorder %s530_s25, %s530_s25 }
  0xc4   : > { %p2740_p5 = scmp.ne.s32.totalorder %s530_s25, %s2739_s26  ;;  %p2748_p11 = scmp.lt.s32.totalorder %s2739_s26, %s2739_s26 }
  0xc6   : > { %p2742_p7 = pnand %p2740_p5, %p3095_p8  ;;  %p2749_p12 = por %p2748_p11, %p2747_p10 }
  0xc8   : > { %p2743_p9 = pneg %p2742_p7 }
  0xca   : > { %p2750_p4 = pnand %p2749_p12, %p2743_p9 }
  0xcc   : > { %2753 = shalt.err (!%p2750_p4)
}
  0xcd   : > { %s2935_s15 = smov 128   ;;  %s2936_s0 = smov 8  }
  0xce   : > { %2390 = dma.hbm_to_vmem [thread:$0]  (!%p3079_p6), %s3752_s9, 256, %s530_s25, [#allocation17], %s2935_s15, %s2935_s15, %s2936_s0  }
  0xcf   : > { %s2937_s21 = smov [#allocation21]   ;;  %s2938_s18 = smov [#allocation22]  }
  0xd0   : > { %s557_s16 = sshll.u32 %s2937_s21, 4  ;;  %s568_s19 = sshll.u32 %s2938_s18, 4  ;;  %s558_s16 = int_to_ptr.vmem [resolvable:$true] %s557_s16  ;;  %s569_s19 = int_to_ptr.vmem [resolvable:$true] %s568_s19 }
  0xd1   : > { %s2754_s23 = scalar_lea.hbm %s3755_s12, 16 }
  0xd2   : > { %p2755_p13 = scmp.ne.s32.totalorder %s3755_s12, %s2754_s23  ;;  %p2761_p3 = scmp.lt.u32.totalorder %s2754_s23, %s3755_s12 }
  0xd4   : > { %p2757_p0 = pnand %p2755_p13, %p3095_p8 }
  0xd6   : > { %p2758_p1 = pneg %p2757_p0 }
  0xd8   : > { %p2763_p2 = pnand %p2761_p3, %p2758_p1 }
  0xda   : > { %2766 = shalt.err (!%p2763_p2)
}
  0xdb   : > { %s2767_s25 = scalar_lea.vmem %s558_s16, 16  ;;  %s2774_s15 = scalar_lea.vmem %s558_s16, 32 }
  0xdc   : > { %p2768_p5 = scmp.ne.s32.totalorder %s558_s16, %s2767_s25  ;;  %p2775_p10 = scmp.lt.s32.totalorder %s558_s16, %s558_s16 }
  0xdd   : > { %p2776_p11 = scmp.lt.s32.totalorder %s2774_s15, %s2767_s25 }
  0xde   : > { %p2770_p7 = pnand %p2768_p5, %p3095_p8 }
  0xdf   : > { %p2777_p12 = por %p2776_p11, %p2775_p10 }
  0xe0   : > { %p2771_p9 = pneg %p2770_p7 }
  0xe2   : > { %p2778_p4 = pnand %p2777_p12, %p2771_p9 }
  0xe4   : > { %2781 = shalt.err (!%p2778_p4)
}
  0xe5   : > { %2396 = dma.hbm_to_vmem [thread:$0]  (!%p3079_p6), %s3755_s12, 16, %s558_s16, [#allocation20]  }
  0xe6   : > { %s2782_s11 = scalar_lea.hbm %s3756_s13, 16 }
  0xe7   : > { %p2783_p13 = scmp.ne.s32.totalorder %s3756_s13, %s2782_s11  ;;  %p2789_p3 = scmp.lt.u32.totalorder %s2782_s11, %s3756_s13 }
  0xe9   : > { %p2785_p0 = pnand %p2783_p13, %p3095_p8 }
  0xeb   : > { %p2786_p1 = pneg %p2785_p0 }
  0xed   : > { %p2791_p2 = pnand %p2789_p3, %p2786_p1 }
  0xef   : > { %2794 = shalt.err (!%p2791_p2)
}
  0xf0   : > { %s2795_s6 = scalar_lea.vmem %s569_s19, 16  ;;  %s2802_s16 = scalar_lea.vmem %s569_s19, 32 }
  0xf1   : > { %p2796_p5 = scmp.ne.s32.totalorder %s569_s19, %s2795_s6  ;;  %p2803_p10 = scmp.lt.s32.totalorder %s569_s19, %s569_s19 }
  0xf2   : > { %p2804_p11 = scmp.lt.s32.totalorder %s2802_s16, %s2795_s6 }
  0xf3   : > { %p2798_p7 = pnand %p2796_p5, %p3095_p8 }
  0xf4   : > { %p2805_p12 = por %p2804_p11, %p2803_p10 }
  0xf5   : > { %p2799_p9 = pneg %p2798_p7 }
  0xf7   : > { %p2806_p4 = pnand %p2805_p12, %p2799_p9 }
  0xf9   : > { %2809 = shalt.err (!%p2806_p4)
}
  0xfa   : > { %2399 = dma.hbm_to_vmem [thread:$0]  (!%p3079_p6), %s3756_s13, 16, %s569_s19, [#allocation23]  }
  0xfb   : > { %s2175_s2 = sadd.s32 4294967294, %s2926_s30   ;;  %s3276_s24 = sadd.s32 1, %s2926_s30  }
  0xfc   : > { %s46_s25 = sadd.s32 1, %s2922_s29  ;;  %s43_s15 = ssub.s32 %s2926_s30, %s3276_s24 }
  0xfd   : > { %p53_p8 = scmp.ne.s32.totalorder %s2922_s29, %s2918_s28  ;;  %p44_p13 = scmp.eq.s32.totalorder %s43_s15, 0 }
  0xfe   : > { %p54_p0 = scmp.eq.s32.totalorder %s2926_s30, 0  ;;  %p59_p1 = scmp.ne.s32.totalorder %s2918_s28, %s2914_s27 }
  0xff   : > { %p440_p3 = scmp.eq.s32.totalorder %s3061_s1, 1  ;;  %p3794_p5 = scmp.eq.s32.totalorder %s3061_s1, 0 }
 0x100   : > { %s3288_s4 = scalar_select %p44_p13, %s2922_s29, %s46_s25  }
 0x101   : > { %p55_p2 = por %p54_p0, %p53_p8  ;;  %p3292_p7 = por %p3794_p5, %p59_p1 }
 0x102   : > { %p3296_p6 = por %p440_p3, %p53_p8  ;;  %p446_p9 = scmp.eq.s32.totalorder %s2175_s2, 1 }
 0x103   : > { %p2417_p10 = scmp.lt.s32.totalorder %s2926_s30, 2  ;;  %s591_s5 = sand.u32 1, %s2922_s29  }
 0x104   : > { %s3796_s19 = scalar_select %p3296_p6, 1, 0 }
 0x105   : > { %p3302_p11 = por %p446_p9, %p59_p1  ;;  %s2187_s11 = sshll.u32 %s591_s5, 3 }
 0x106   : > { %s2188_s14 = sshll.u32 %s2926_s30, 7  ;;  %s3798_s22 = sld [smem:[#allocation32_spill]] }
 0x107   : > { %s3797_s7 = scalar_select %p3302_p11, 1, 0 }
 0x108   : > { %s595_s16 = scalar_lea.vmem [#allocation7], %s2187_s11  ;;  %p3312_p12 = pnand %p2417_p10, %p55_p2 }
 0x109   : > { %s602_s23 = sshll.u32 %s595_s16, 4  ;;  %s592_s2 = scalar_lea.sflag [#allocation8], %s591_s5  ;;  %s3316_s23 = int_to_ptr.vmem [resolvable:$true] %s602_s23 }
 0x10a   : > { %p2812_p8 = pneg %p3312_p12 }
 0x10c   : > { %s3310_s6 = scalar_lea.hbm %s3798_s22, %s2188_s14  ;;  %s2815_s14 = scalar_lea.hbm %s3798_s22, 256 }
 0x10d   : > { %s2810_s25 = scalar_lea.hbm %s3310_s6, 128  ;;  %p2816_p1 = scmp.lt.u32.totalorder %s3310_s6, %s3798_s22 }
 0x10e   : > { %p2811_p4 = scmp.ne.s32.totalorder %s3310_s6, %s2810_s25  ;;  %p2817_p3 = scmp.lt.u32.totalorder %s2815_s14, %s2810_s25 }
 0x10f   : > { %p2819_p5 = scmp.lt.u32.totalorder %s2810_s25, %s3310_s6 }
 0x110   : > { %p2813_p13 = pnand %p2812_p8, %p2811_p4  ;;  %p2818_p2 = por %p2817_p3, %p2816_p1 }
 0x112   : > { %p2814_p0 = pneg %p2813_p13  ;;  %p2820_p9 = por %p2819_p5, %p2818_p2 }
 0x114   : > { %p2821_p10 = pnand %p2820_p9, %p2814_p0 }
 0x116   : > { %2824 = shalt.err (!%p2821_p10)
}
 0x117   : > { %s2825_s5 = scalar_lea.vmem %s3316_s23, 128  ;;  %s2939_s16 = smov [#allocation7]  }
 0x118   : > { %p2826_p4 = scmp.ne.s32.totalorder %s3316_s23, %s2825_s5  ;;  %s2830_s15 = sshll.u32 %s2939_s16, 4  ;;  %s2831_s15 = int_to_ptr.vmem [resolvable:$false] %s2830_s15 }
 0x119   : > { %s2832_s11 = scalar_lea.vmem %s2831_s15, 256  ;;  %p2833_p6 = scmp.lt.s32.totalorder %s3316_s23, %s2831_s15 }
 0x11a   : > { %p2828_p13 = pnand %p2826_p4, %p2812_p8  ;;  %p2834_p1 = scmp.lt.s32.totalorder %s2832_s11, %s2825_s5 }
 0x11c   : > { %p2829_p11 = pneg %p2828_p13  ;;  %p2835_p3 = por %p2834_p1, %p2833_p6 }
 0x11e   : > { %p2836_p2 = pnand %p2835_p3, %p2829_p11 }
 0x120   : > { %2839 = shalt.err (!%p2836_p2)
}
 0x121   : > { %2403 = dma.hbm_to_vmem [thread:$0]  (!%p3312_p12), %s3310_s6, 128, %s3316_s23, %s592_s2  }
 0x122   : > { %p3800_p0 = scmp.ne.s32.totalorder %s3787_s20, 0 }
 0x123   : > { %s3346_s25 = sand.u32 (!%p3800_p0), 1, %s2918_s28  }
 0x124   : > { %611 = sbr.rel (%p3800_p0) target bundleno = 2406 (0x966), region = 92  ;;  %s2190_s14 = sshll.u32 (!%p3800_p0), %s3346_s25, 3 }
 0x125   : > { %s614_s21 = scalar_lea.sflag (!%p3800_p0), [#allocation8], %s3346_s25  ;;  %s3352_s18 = scalar_lea.vmem (!%p3800_p0), [#allocation7], %s2190_s14 }
 0x12b   : > { %2885 = dma.done.wait (%p3292_p7), %s614_s21, 128  }
 0x12c   : > { %2887 = vsyncadd (%p3292_p7), %s614_s21, 4294967168  ;;  %p3801_p6 = scmp.eq.s32.totalorder %s3061_s1, 0 }
 0x12e   : > { %2889 = dma.done.wait (%p3801_p6), [#allocation11], 80   ;;  %p3802_p11 = pmov %p3801_p6 }
 0x12f   : > { %p3803_p12 = pmov %p3801_p6 }
 0x130   : > { %2891 = vsyncadd (%p3802_p11), [#allocation11], 4294967216 }
 0x131   : > { %2893 = dma.done.wait (%p3803_p12), [#allocation14], 48   ;;  %p3804_p8 = pmov %p3801_p6 }
 0x132   : > { %p3805_p5 = pmov %p3801_p6 }
 0x133   : > { %2895 = vsyncadd (%p3804_p8), [#allocation14], 4294967248 }
 0x134   : > { %2897 = dma.done.wait (%p3805_p5), [#allocation17], 272   ;;  %p3806_p9 = pmov %p3805_p5 }
 0x135   : > { %p3807_p7 = pmov %p3805_p5 }
 0x136   : > { %2899 = vsyncadd (%p3806_p9), [#allocation17], 4294967024 }
 0x137   : > { %2901 = dma.done.wait (%p3807_p7), [#allocation20], 32   ;;  %p3808_p10 = pmov %p3805_p5 }
 0x138   : > { %p3809_p4 = pmov %p3805_p5 }
 0x139   : > { %2903 = vsyncadd (%p3808_p10), [#allocation20], 4294967264 }
 0x13a   : > { %2905 = dma.done.wait (%p3809_p4), [#allocation23], 16   ;;  %p3810_p13 = pmov %p3809_p4 }
 0x13b   : > { %vm714_vm0 = vcmask 261120   ;;  %v707_v0 = vld [vmem:[%s3352_s18] sm:$0xff]  ;;  %s3811_s3 = sld [smem:[#allocation35_spill]]  ;;  %v2940_v10 = vmov 0   ;;  %s3812_s21 = sld [smem:[#allocation33_spill]]  ;;  %v2941_v30 = vmov 0.0   ;;  %v809_v31 = vlaneseq }
 0x13c   : > { %2907 = vsyncadd (%p3810_p13), [#allocation23], 4294967280  ;;  %v715_v1 = vsel %vm714_vm0, %v707_v0, 0.0  ;;  %799 = vmatprep.mubr.bf16.mxu0 %v2940_v10  ;;  %v2202_v18 = vld [vmem:[#allocation10] ss:$0 sm:$0xff]  ;;  %s3813_s6 = sld [smem:[#allocation38_spill]]  ;;  %2287 = vmatprep.subr.mxu1 %v2941_v30 }
 0x13d   : > { %716 = vadd.xlane.f32.xlu0 %v715_v1  ;;  %vm2942_vm1 = vmmov 0   ;;  %v3425_v32 = vshrl.u32 %v809_v31, 7  ;;  %v808_v34 = vld [vmem:[#allocation12] sm:$0xf]  ;;  %v2208_v40 = vld [vmem:[#allocation13] ss:$0 sm:$0xff] }
 0x13e   : > { %2289 = vmatprep.mubr.msk.f32.mxu1 %vm2942_vm1, %v2941_v30  ;;  %vm955_vm5 = vcmask 523264   ;;  %vm1052_vm6 = vcmask 1041408   ;;  %vm1048_vm7 = vcmask 15360   ;;  %vm1138_vm8 = vcmask 130048   ;;  %s3814_s16 = sld [smem:[#allocation40_spill]]  ;;  %s3816_s20 = sld [smem:[#allocation43_spill]] }
 0x13f   : > { %v3428_v33 = vsub.s32 3, %v3425_v32  ;;  %v815_v35 = vand.u32 7, %v3425_v32  ;;  %v3432_v36 = vsub.s32 0, %v3425_v32  ;;  %v3436_v38 = vsub.s32 1, %v3425_v32  ;;  %s3817_s0 = sld [smem:[#allocation42_spill]]  ;;  %s3818_s2 = sld [smem:[#allocation44_spill]] }
 0x140   : > { %v3440_v42 = vsub.s32 2, %v3425_v32  ;;  %vm1687_vm9 = vcmask 1040384   ;;  %vm1690_vm10 = vcmask 1042432   ;;  %vm1692_vm11 = vcmask 1043456   ;;  %s2248_s5 = sshll.u32 %s3061_s1, 7  ;;  %s705_s15 = scalar_lea.vmem [#allocation24], %s2190_s14 }
 0x141   : > { %v2475_v7 = vld [vmem:[%s3811_s3 + $0x4] ss:$8 sps:$4 sm:$0xff]   ;;  %v2477_v8 = vld [vmem:[%s3811_s3] ss:$8 sps:$4 sm:$0xff]   ;;  %v2478_v9 = vld [vmem:[%s3811_s3 + $0x14] ss:$8 sps:$4 sm:$0xff]   ;;  %v827_v37 = vrot.slane %v808_v34, %v3428_v33  ;;  %v844_v41 = vrot.slane %v808_v34, %v3432_v36  ;;  %v855_v48 = vrot.slane %v808_v34, %v3436_v38 }
 0x142   : > { %767 = vmatprep.subr.bf16.mxu0 %v2475_v7  ;;  %v2480_v11 = vld [vmem:[%s3811_s3 + $0x10] ss:$8 sps:$4 sm:$0xff]   ;;  %v2201_v16 = vld [vmem:[%s3812_s21] ss:$0 sm:$0xff]  ;;  %v2486_v24 = vld [vmem:[%s3813_s6 + $0x1c] ss:$12 sps:$4 sm:$0xff]   ;;  %v866_v55 = vrot.slane %v808_v34, %v3440_v42 }
 0x143   : > { %768 = vmatpush1.bf16.msra.mxu0 %v2477_v8  ;;  %v2483_v22 = vld [vmem:[%s3813_s6 + $0x4] ss:$12 sps:$4 sm:$0xff]   ;;  %v2481_v23 = vld [vmem:[%s3813_s6] ss:$12 sps:$4 sm:$0xff]   ;;  %v2490_v29 = vld [vmem:[%s3813_s6 + $0x48] ss:$12 sps:$4 sm:$0xff]  }
 0x144   : > { %769 = vmatprep.subr.bf16.mxu0 %v2478_v9  ;;  %v2484_v25 = vld [vmem:[%s3813_s6 + $0x18] ss:$12 sps:$4 sm:$0xff]   ;;  %v2489_v26 = vld [vmem:[%s3813_s6 + $0x34] ss:$12 sps:$4 sm:$0xff]   ;;  %v2487_v27 = vld [vmem:[%s3813_s6 + $0x30] ss:$12 sps:$4 sm:$0xff]  }
 0x145   : > { %v2492_v28 = vld [vmem:[%s3813_s6 + $0x4c] ss:$12 sps:$4 sm:$0xff]   ;;  %vm837_vm2 = vcmp.ge.s32.totalorder %v815_v35, 3  ;;  %vm848_vm3 = vcmp.ge.s32.totalorder %v815_v35, 2  ;;  %vm859_vm4 = vcmp.ge.s32.totalorder %v815_v35, 1  ;;  %vm1694_vm12 = vcmask 1044480  }
 0x146   : > { %v2496_v7 = vld [vmem:[%s3813_s6 + $0x50] ss:$12 sps:$4 sm:$0xff]   ;;  %v1040_v8 = vld [vmem:[#allocation15] sm:$0x3]  ;;  %vm1696_vm13 = vcmask 1045504   ;;  %vm1698_vm14 = vcmask 1046528  }
 0x147   : > { %770 = vmatpush1.bf16.msra.mxu0 %v2480_v11  ;;  %2288 = vmatpush3.msk.msra.mxu1 %vm1052_vm6, %v1040_v8  ;;  %s2019_s11 = sshll.u32 %s705_s15, 4  ;;  %s3819_s3 = sld [smem:[#allocation45_spill]]  ;;  %s3700_s11 = int_to_ptr.vmem [resolvable:$true] %s2019_s11 }
 0x148   : > { %959 = vmatprep.subr.bf16.mxu0 %v2483_v22  ;;  %2304 = vmatprep.subr.bf16.mxu1 %v2941_v30  ;;  %s2006_s1 = scalar_lea.sflag [#allocation9], %s3346_s25  ;;  %s2840_s14 = scalar_lea.vmem %s3700_s11, 128 }
 0x149   : > { %p2841_p1 = scmp.ne.s32.totalorder %s3700_s11, %s2840_s14  ;;  %p3820_p3 = scmp.ne.s32.totalorder %s3796_s19, 0 }
 0x14a   : > { %s2944_s23 = smov [#allocation24]  }
 0x14b   : > { %p2842_p2 = pnand %p2841_p1, %p3820_p3  ;;  %s2844_s26 = sshll.u32 %s2944_s23, 4  ;;  %s2845_s26 = int_to_ptr.vmem [resolvable:$false] %s2844_s26 }
 0x14c   : > { %p2847_p6 = scmp.lt.s32.totalorder %s3700_s11, %s2845_s26 }
 0x14d   : > { %p2843_p0 = pneg %p2842_p2 }
 0x1ca   : > { %v717_v2 = vpop.xlane.xlu0 %716 }
 0x1cb   : > { %v719_v3 = vmul.f32 0.03125, %v717_v2 }
 0x1cd   : > { %v720_v4 = vsub.f32 %v707_v0, %v719_v3  ;;  %v2493_v3 = vld [vmem:[%s3813_s6 + $0x8] ss:$12 sps:$4 sm:$0xff]  }
 0x1cf   : > { %v721_v5 = vmul.f32 %v720_v4, %v720_v4 }
 0x1d1   : > { %v722_v6 = vsel %vm714_vm0, %v721_v5, 0.0  ;;  %v2494_v5 = vld [vmem:[%s3813_s6 + $0x20] ss:$12 sps:$4 sm:$0xff]  }
 0x1d2   : > { %723 = vadd.xlane.f32.xlu0 %v722_v6  ;;  %v2495_v6 = vld [vmem:[%s3813_s6 + $0x38] ss:$12 sps:$4 sm:$0xff]   ;;  %s3698_s6 = scalar_lea.hbm %s3819_s3, %s2248_s5 }
 0x25f   : > { %v724_v12 = vpop.xlane.xlu0 %723 }
 0x260   : > { %v725_v13 = vmul.f32 0.03125, %v724_v12 }
 0x262   : > { %v726_v14 = vadd.f32 1e-05, %v725_v13 }
 0x264   : > { %2513 = vrsqrt.f32 %v726_v14 }
 0x26e   : > { %v2514_v15 = vpop.eup %2513 }
 0x26f   : > { %v728_v17 = vmul.f32 %v2514_v15, %v720_v4 }
 0x271   : > { %v735_v19 = vmul.f32 %v2201_v16, %v728_v17  ;;  %v1331_v16 = vsub.s32 4, %v3425_v32 }
 0x273   : > { %v742_v20 = vadd.f32 %v2202_v18, %v735_v19  ;;  %v1342_v18 = vsub.s32 5, %v3425_v32 }
 0x275   : > { %v743_v21 = vpack.c.bf16 %v742_v20, %v742_v20 }
 0x277   : > { %2207 = vmatmul.mubr.msk.bf16.vlgmr.msra.gmra.mrb[0].mxu0 %vm714_vm0, %v743_v21 }
 0x278   : > { %991 = vmatprep.mubr.bf16.mxu0 %v2940_v10  ;;  %960 = vmatpush1.bf16.msra.mxu0 %v2481_v23  ;;  %v1353_v23 = vsub.s32 6, %v3425_v32 }
 0x279   : > { %961 = vmatprep.subr.bf16.mxu0 %v2486_v24 }
 0x27c   : > { %962 = vmatpush1.bf16.msra.mxu0 %v2484_v25 }
 0x27d   : > { %963 = vmatprep.subr.bf16.mxu0 %v2489_v26 }
 0x280   : > { %964 = vmatpush1.bf16.msra.mxu0 %v2487_v27  ;;  %v1364_v27 = vsub.s32 7, %v3425_v32 }
 0x281   : > { %965 = vmatprep.subr.bf16.mxu0 %v2492_v28 }
 0x284   : > { %966 = vmatpush1.bf16.msra.mxu0 %v2490_v29 }
 0x285   : > { %2275 = vmatprep.subr.bf16.mxu0 %v2941_v30 }
 0x34a   : > { %v801_v39 = vpop.f32.mrb[0].mxu0 }
 0x34b   : > { %v828_v43 = vmul.f32 %v827_v37, %v801_v39  ;;  %v836_v44 = vrot.slane %v801_v39, 5  ;;  %v847_v45 = vrot.slane %v801_v39, 6  ;;  %v858_v46 = vrot.slane %v801_v39, 7  ;;  %v3442_v47 = vpop.f32.mrb[1].mxu0 }
 0x34c   : > { %v805_v49 = vpop.f32.mrb[2].mxu0 }
 0x34d   : > { %v835_v50 = vadd.f32 %v2208_v40, %v828_v43  ;;  %v840_v51 = vsel %vm837_vm2, %v836_v44, 0.0  ;;  %v851_v52 = vsel %vm848_vm3, %v847_v45, 0.0  ;;  %v806_v53 = vpop.f32.mrb[3].mxu0  ;;  %v862_v56 = vsel %vm859_vm4, %v858_v46, 0.0  ;;  %v2501_v44 = vld [vmem:[%s3814_s16 + $0x10] sm:$0xff]   ;;  %v2502_v45 = vld [vmem:[%s3814_s16 + $0x18] sm:$0xff]  }
 0x34e   : > { %v845_v54 = vmul.f32 %v844_v41, %v840_v51  ;;  %v856_v58 = vmul.f32 %v855_v48, %v851_v52  ;;  %v867_v60 = vmul.f32 %v866_v55, %v862_v56  ;;  %v2223_v48 = vld [vmem:[#allocation16] ss:$0 sm:$0xff] }
 0x350   : > { %v846_v57 = vadd.f32 %v845_v54, %v835_v50 }
 0x352   : > { %v857_v59 = vadd.f32 %v856_v58, %v846_v57 }
 0x354   : > { %v868_v61 = vadd.f32 %v867_v60, %v857_v59 }
 0x356   : > { %v869_v62 = vmul.f32 0.5, %v868_v61 }
 0x358   : > { %2515 = vtanh.f32 %v869_v62 }
 0x362   : > { %v2516_v63 = vpop.eup %2515 }
 0x363   : > { %v871_v0 = vadd.f32 1.0, %v2516_v63  ;;  %v2943_v63 = vmov 1966171168  }
 0x365   : > { %v872_v1 = vmul.f32 0.5, %v871_v0  ;;  %v1150_v0 = vunpack.c.l.s4 %v2943_v63 }
 0x367   : > { %v3446_v2 = vmul.f32 %v872_v1, %v868_v61 }
 0x369   : > { %v890_v4 = vpack.c.bf16 %v3446_v2, %v3446_v2 }
 0x36b   : > { %2221 = vmatmul.mubr.msk.bf16.vlgmr.msra.gmra.mrb[4].mxu0 %vm955_vm5, %v890_v4 }
 0x36c   : > { %2276 = vmatpush3.bf16.msra.mxu0 %v2493_v3  ;;  %2283 = vmatprep.mubr.msk.bf16.mxu0 %vm2942_vm1, %v2941_v30 }
 0x36d   : > { %2277 = vmatprep.subr.bf16.mxu0 %v2941_v30 }
 0x370   : > { %2278 = vmatpush3.bf16.msra.mxu0 %v2494_v5 }
 0x371   : > { %2279 = vmatprep.subr.bf16.mxu0 %v2941_v30 }
 0x374   : > { %2280 = vmatpush3.bf16.msra.mxu0 %v2495_v6 }
 0x375   : > { %2281 = vmatprep.subr.bf16.mxu0 %v2941_v30 }
 0x378   : > { %2282 = vmatpush3.bf16.msra.mxu0 %v2496_v7  ;;  %v1151_v7 = vunpack.c.0.s8 %v1150_v0 }
 0x379   : > { %2292 = vmatprep.subr.bf16.mxu0 %v2941_v30 }
 0x37b   : > { %2284 = vmatmul.mubr.msk.bf16.vlgmr.msra.gmra.mrb[8].mxu0 %vm955_vm5, %v890_v4 }
 0x37c   : > { %2300 = vmatprep.mubr.msk.bf16.mxu0 %vm2942_vm1, %v2941_v30 }
 0x43e   : > { %v993_v9 = vpop.f32.mrb[4].mxu0 }
 0x43f   : > { %v995_v10 = vpop.f32.mrb[5].mxu0  ;;  %2290 = vmatmul.mubr.msk.f32.vlgmr.msra.gmra.mrb[0].mxu1 %vm1048_vm7, %v993_v9 }
 0x440   : > { %1139 = vst.msk [vmem:[#allocation4] sm:$0xff] %vm1138_vm8, %v995_v10  ;;  %v997_v11 = vpop.f32.mrb[6].mxu0  ;;  %2308 = vmatprep.mubr.msk.bf16.mxu1 %vm2942_vm1, %v2941_v30 }
 0x441   : > { %v998_v12 = vpop.f32.mrb[7].mxu0  ;;  %v3529_v11 = vsub.s32 %v1151_v7, %v3425_v32 }
 0x447   : > { %v1145_v13 = vld [vmem:[#allocation4] sm:$0xff] }
 0x448   : > { %v1299_v14 = vrot.slane %v1145_v13, %v3436_v38  ;;  %v1288_v15 = vrot.slane %v1145_v13, %v3432_v36  ;;  %v1332_v17 = vrot.slane %v1145_v13, %v1331_v16  ;;  %v1343_v22 = vrot.slane %v1145_v13, %v1342_v18 }
 0x449   : > { %v1354_v25 = vrot.slane %v1145_v13, %v1353_v23  ;;  %v1310_v26 = vrot.slane %v1145_v13, %v3440_v42  ;;  %v1365_v28 = vrot.slane %v1145_v13, %v1364_v27  ;;  %v1321_v31 = vrot.slane %v1145_v13, %v3428_v33 }
 0x44a   : > { %1301 = vbcast.lane.b32.xlu0 %v1299_v14, 256  ;;  %1290 = vbcast.lane.b32.xlu1 %v1288_v15, 256 }
 0x44e   : > { %v1034_v19 = vpop.f32.mrb[8].mxu0  ;;  %1338 = vbcast.lane.b32.xlu0 %v1332_v17, 264  ;;  %1294 = vbcast.lane.b32.xlu1 %v1288_v15, 264 }
 0x44f   : > { %1140 = vst.msk [vmem:[#allocation5] sm:$0xff] %vm1138_vm8, %v1034_v19  ;;  %v2285_v20 = vpop.f32.mrb[9].mxu0  ;;  %v3537_v19 = vld [vmem:[#allocation18] sm:$0xff] }
 0x450   : > { %v1037_v21 = vpop.f32.mrb[10].mxu0 }
 0x451   : > { %v2286_v24 = vpop.f32.mrb[11].mxu0 }
 0x452   : > { %1349 = vbcast.lane.b32.xlu0 %v1343_v22, 264  ;;  %1305 = vbcast.lane.b32.xlu1 %v1299_v14, 264 }
 0x456   : > { %1360 = vbcast.lane.b32.xlu0 %v1354_v25, 264  ;;  %1312 = vbcast.lane.b32.xlu1 %v1310_v26, 256  ;;  %v1146_v29 = vld [vmem:[#allocation5] sm:$0xff] }
 0x457   : > { %v1486_v34 = vrot.slane %v1146_v29, %v3432_v36  ;;  %v1512_v35 = vrot.slane %v1146_v29, %v3436_v38  ;;  %v1538_v37 = vrot.slane %v1146_v29, %v3440_v42  ;;  %v1564_v39 = vrot.slane %v1146_v29, %v3428_v33  ;;  %v2499_v33 = vld [vmem:[%s3814_s16] sm:$0xff]   ;;  %v2500_v42 = vld [vmem:[%s3814_s16 + $0x8] sm:$0xff]  }
 0x458   : > { %v1590_v40 = vrot.slane %v1146_v29, %v1331_v16  ;;  %v1616_v41 = vrot.slane %v1146_v29, %v1342_v18  ;;  %v1642_v43 = vrot.slane %v1146_v29, %v1353_v23  ;;  %v1668_v38 = vrot.slane %v1146_v29, %v1364_v27  ;;  %2293 = vmatpush3.bf16.msra.mxu0 %v2499_v33  ;;  %v1142_v23 = vld [vmem:[#allocation18 + $0x8] sm:$0xff] }
 0x459   : > { %2294 = vmatprep.subr.bf16.mxu0 %v2941_v30 }
 0x45a   : > { %1371 = vbcast.lane.b32.xlu0 %v1365_v28, 264  ;;  %1316 = vbcast.lane.b32.xlu1 %v1310_v26, 264 }
 0x45c   : > { %2295 = vmatpush3.bf16.msra.mxu0 %v2500_v42 }
 0x45d   : > { %2296 = vmatprep.subr.bf16.mxu0 %v2941_v30 }
 0x45e   : > { %1323 = vbcast.lane.b32.xlu1 %v1321_v31, 256  ;;  %1492 = vbcast.lane.b32.xlu0 %v1486_v34, 264 }
 0x460   : > { %2297 = vmatpush3.bf16.msra.mxu0 %v2501_v44 }
 0x461   : > { %2298 = vmatprep.subr.bf16.mxu0 %v2941_v30 }
 0x462   : > { %1327 = vbcast.lane.b32.xlu1 %v1321_v31, 264  ;;  %1518 = vbcast.lane.b32.xlu0 %v1512_v35, 264 }
 0x464   : > { %2299 = vmatpush3.bf16.msra.mxu0 %v2502_v45 }
 0x466   : > { %1334 = vbcast.lane.b32.xlu1 %v1332_v17, 256  ;;  %1544 = vbcast.lane.b32.xlu0 %v1538_v37, 264 }
 0x46a   : > { %1345 = vbcast.lane.b32.xlu1 %v1343_v22, 256  ;;  %1570 = vbcast.lane.b32.xlu0 %v1564_v39, 264 }
 0x46e   : > { %1356 = vbcast.lane.b32.xlu1 %v1354_v25, 256  ;;  %1596 = vbcast.lane.b32.xlu0 %v1590_v40, 264 }
 0x472   : > { %1367 = vbcast.lane.b32.xlu1 %v1365_v28, 256  ;;  %1622 = vbcast.lane.b32.xlu0 %v1616_v41, 264 }
 0x476   : > { %1648 = vbcast.lane.b32.xlu0 %v1642_v43, 264  ;;  %1488 = vbcast.lane.b32.xlu1 %v1486_v34, 256 }
 0x47a   : > { %1674 = vbcast.lane.b32.xlu0 %v1668_v38, 264  ;;  %1514 = vbcast.lane.b32.xlu1 %v1512_v35, 256 }
 0x47e   : > { %1540 = vbcast.lane.b32.xlu1 %v1538_v37, 256 }
 0x482   : > { %1566 = vbcast.lane.b32.xlu1 %v1564_v39, 256 }
 0x486   : > { %1592 = vbcast.lane.b32.xlu1 %v1590_v40, 256 }
 0x48a   : > { %1618 = vbcast.lane.b32.xlu1 %v1616_v41, 256 }
 0x48e   : > { %1644 = vbcast.lane.b32.xlu1 %v1642_v43, 256 }
 0x492   : > { %1670 = vbcast.lane.b32.xlu1 %v1668_v38, 256 }
 0x4bc   : > { %v3505_v46 = vpop.permute.xlu1 %1290  ;;  %v3517_v1 = vpop.permute.xlu0 %1301 }
 0x4c0   : > { %v3507_v52 = vpop.permute.xlu1 %1294  ;;  %v3523_v9 = vpop.permute.xlu0 %1338 }
 0x4c4   : > { %v3509_v56 = vpop.permute.xlu1 %1305  ;;  %v3531_v13 = vpop.permute.xlu0 %1349 }
 0x4c8   : > { %v3511_v57 = vpop.permute.xlu1 %1312  ;;  %v3541_v22 = vpop.permute.xlu0 %1360 }
 0x4cc   : > { %v3513_v60 = vpop.permute.xlu1 %1316  ;;  %v3548_v31 = vpop.permute.xlu0 %1371 }
 0x4d0   : > { %v3515_v61 = vpop.permute.xlu1 %1323 }
 0x4d4   : > { %v3519_v3 = vpop.permute.xlu1 %1327 }
 0x4d8   : > { %v3525_v10 = vpop.permute.xlu1 %1334 }
 0x4dc   : > { %v3533_v14 = vpop.permute.xlu1 %1345 }
 0x4e0   : > { %v3543_v32 = vpop.permute.xlu1 %1356 }
 0x4e4   : > { %v3550_v34 = vpop.permute.xlu1 %1367 }
 0x512   : > { %v1122_v49 = vpop.f32.mrb[0].mxu1 }
 0x513   : > { %v1123_v50 = vadd.f32 %v2223_v48, %v1122_v49  ;;  %v2291_v51 = vpop.f32.mrb[1].mxu1 }
 0x514   : > { %v3561_v51 = vpop.permute.xlu1 %1488 }
 0x515   : > { %v1127_v53 = vand.u32 2147483647, %v1123_v50  ;;  %v1126_v4 = vmax.f32 %v1123_v50, 0.0  ;;  %v3559_v50 = vpop.permute.xlu0 %1492 }
 0x517   : > { %v1128_v54 = vsub.f32 0.0, %v1127_v53 }
 0x519   : > { %v1129_v55 = vmul.f32 1.442695, %v1128_v54 }
 0x51b   : > { %2517 = vpow2.f32 %v1129_v55 }
 0x525   : > { %v2518_v58 = vpop.eup %2517 }
 0x526   : > { %v1131_v59 = vadd.f32 1.0, %v2518_v58 }
 0x528   : > { %2519 = vlog2.f32 %v1131_v59 }
 0x532   : > { %v2520_v62 = vpop.eup %2519 }
 0x533   : > { %v1133_v5 = vmul.f32 0.6931472, %v2520_v62 }
 0x535   : > { %v1134_v6 = vadd.f32 %v1133_v5, %v1126_v4 }
 0x537   : > { %1135 = vst.msk [vmem:[#allocation2] sm:$0xff] %vm955_vm5, %v1134_v6  ;;  %v1136_v8 = vmul.f32 %v1134_v6, %v3446_v2 }
 0x539   : > { %1137 = vst.msk [vmem:[#allocation3] sm:$0xff] %vm955_vm5, %v1136_v8 }
 0x53e   : > { %v1143_v12 = vld [vmem:[#allocation2] sm:$0xff] }
 0x53f   : > { %v1155_v15 = vrot.slane %v1143_v12, %v3529_v11  ;;  %v1148_v18 = vcombine.high %v1143_v12, %v1143_v12 }
 0x540   : > { %v1144_v37 = vld [vmem:[#allocation3] sm:$0xff] }
 0x541   : > { %v1163_v16 = vcombine.high %v1155_v15, %v1155_v15  ;;  %v1171_v17 = vrot.slane %v1155_v15, %v3529_v11  ;;  %v1162_v24 = vrot.slane %v1148_v18, %v3529_v11  ;;  %v1381_v44 = vrot.slane %v1144_v37, %v3529_v11  ;;  %v3571_v18 = vpop.permute.xlu0 %1518 }
 0x542   : > { %v1374_v62 = vcombine.high %v1144_v37, %v1144_v37 }
 0x543   : > { %v1185_v20 = vrot.slane %v1163_v16, %v3529_v11  ;;  %v1200_v21 = vrot.slane %v1171_v17, %v3432_v36  ;;  %v1193_v26 = vcombine.high %v1171_v17, %v1171_v17  ;;  %v1164_v29 = vcombine.high %v1162_v24, %v1162_v24 }
 0x544   : > { %v1178_v38 = vrot.slane %v1162_v24, %v3529_v11  ;;  %v1389_v63 = vcombine.high %v1381_v44, %v1381_v44  ;;  %v1397_v0 = vrot.slane %v1381_v44, %v3529_v11  ;;  %v1388_v17 = vrot.slane %v1374_v62, %v3529_v11 }
 0x545   : > { %v1237_v25 = vmul.f32 %v1200_v21, %v3537_v19  ;;  %v1204_v27 = vrot.slane %v1185_v20, %v3432_v36  ;;  %v1238_v28 = vmul.f32 %v1200_v21, %v1142_v23  ;;  %v1195_v39 = vcombine.high %v1185_v20, %v1185_v20  ;;  %v3573_v20 = vpop.permute.xlu1 %1514 }
 0x546   : > { %v1208_v40 = vrot.slane %v1193_v26, %v3432_v36  ;;  %v1192_v42 = vrot.slane %v1164_v29, %v3529_v11  ;;  %v1194_v53 = vcombine.high %v1178_v38, %v1178_v38  ;;  %v1216_v59 = vrot.slane %v1178_v38, %v3432_v36 }
 0x547   : > { %v1253_v35 = vmul.f32 1.442695, %v1237_v25  ;;  %v1239_v41 = vmul.f32 %v1204_v27, %v3537_v19  ;;  %v1255_v43 = vmul.f32 1.442695, %v1238_v28  ;;  %v1240_v33 = vmul.f32 %v1204_v27, %v1142_v23 }
 0x548   : > { %v1212_v45 = vrot.slane %v1195_v39, %v3432_v36  ;;  %v1241_v48 = vmul.f32 %v1208_v40, %v3537_v19  ;;  %v1242_v54 = vmul.f32 %v1208_v40, %v1142_v23  ;;  %v1196_v58 = vcombine.high %v1192_v42, %v1192_v42 }
 0x549   : > { %2521 = vpow2.f32 %v1253_v35  ;;  %v1257_v49 = vmul.f32 1.442695, %v1239_v41  ;;  %v1259_v55 = vmul.f32 1.442695, %v1240_v33  ;;  %v1220_v4 = vrot.slane %v1192_v42, %v3432_v36 }
 0x54a   : > { %2523 = vpow2.f32 %v1255_v43  ;;  %v1243_v5 = vmul.f32 %v1212_v45, %v3537_v19  ;;  %v1261_v6 = vmul.f32 1.442695, %v1241_v48  ;;  %v1224_v7 = vrot.slane %v1194_v53, %v3432_v36 }
 0x54b   : > { %2525 = vpow2.f32 %v1257_v49  ;;  %v1244_v8 = vmul.f32 %v1212_v45, %v1142_v23  ;;  %v1263_v12 = vmul.f32 1.442695, %v1242_v54  ;;  %v1228_v15 = vrot.slane %v1196_v58, %v3432_v36  ;;  %v1541_v58 = vpop.permute.xlu1 %1540 }
 0x54c   : > { %2527 = vpow2.f32 %v1259_v55  ;;  %v1245_v16 = vmul.f32 %v1216_v59, %v3537_v19  ;;  %v1246_v21 = vmul.f32 %v1216_v59, %v1142_v23  ;;  %v1411_v24 = vrot.slane %v1389_v63, %v3529_v11  ;;  %v1545_v55 = vpop.permute.xlu0 %1544 }
 0x54d   : > { %v1426_v25 = vrot.slane %v1397_v0, %v3432_v36  ;;  %v1247_v27 = vmul.f32 %v1220_v4, %v3537_v19  ;;  %v1248_v28 = vmul.f32 %v1220_v4, %v1142_v23  ;;  %2529 = vpow2.f32 %v1261_v6 }
 0x54e   : > { %v1265_v29 = vmul.f32 1.442695, %v1243_v5  ;;  %v1249_v37 = vmul.f32 %v1224_v7, %v3537_v19  ;;  %v1250_v39 = vmul.f32 %v1224_v7, %v1142_v23  ;;  %2531 = vpow2.f32 %v1263_v12 }
 0x54f   : > { %v1267_v40 = vmul.f32 1.442695, %v1244_v8  ;;  %v1251_v41 = vmul.f32 %v1228_v15, %v3537_v19  ;;  %v1252_v43 = vmul.f32 %v1228_v15, %v1142_v23  ;;  %v1269_v38 = vmul.f32 1.442695, %v1245_v16 }
 0x550   : > { %v1390_v33 = vcombine.high %v1388_v17, %v1388_v17  ;;  %v1419_v42 = vcombine.high %v1397_v0, %v1397_v0  ;;  %v1430_v44 = vrot.slane %v1411_v24, %v3432_v36  ;;  %v1463_v45 = vmul.f32 %v1426_v25, %v3505_v46 }
 0x551   : > { %2533 = vpow2.f32 %v1265_v29  ;;  %v1271_v49 = vmul.f32 1.442695, %v1246_v21  ;;  %v1464_v53 = vmul.f32 %v1426_v25, %v3507_v52  ;;  %v1273_v59 = vmul.f32 1.442695, %v1247_v27 }
 0x552   : > { %2535 = vpow2.f32 %v1267_v40  ;;  %v1404_v19 = vrot.slane %v1388_v17, %v3529_v11  ;;  %v1275_v63 = vmul.f32 1.442695, %v1248_v28  ;;  %v3585_v0 = vrot.slane %v1390_v33, %v3529_v11 }
 0x553   : > { %v2522_v26 = vpop.eup %2521  ;;  %v1421_v4 = vcombine.high %v1411_v24, %v1411_v24  ;;  %v1277_v6 = vmul.f32 1.442695, %v1249_v37  ;;  %v1434_v7 = vrot.slane %v1419_v42, %v3432_v36  ;;  %v1465_v52 = vmul.f32 %v1430_v44, %v3517_v1  ;;  %v1571_v1 = vpop.permute.xlu0 %1570 }
 0x554   : > { %v2524_v35 = vpop.eup %2523  ;;  %v1479_v48 = vmul.f32 0.0, %v2522_v26  ;;  %2537 = vpow2.f32 %v1269_v38  ;;  %v1279_v12 = vmul.f32 1.442695, %v1250_v39  ;;  %v1466_v15 = vmul.f32 %v1430_v44, %v3509_v56 }
 0x555   : > { %v1480_v54 = vmul.f32 0.0, %v2524_v35  ;;  %v2526_v62 = vpop.eup %2525  ;;  %2539 = vpow2.f32 %v1271_v49  ;;  %v1281_v17 = vmul.f32 1.442695, %v1251_v41  ;;  %v1420_v21 = vcombine.high %v1404_v19, %v1404_v19  ;;  %v1567_v35 = vpop.permute.xlu1 %1566 }
 0x556   : > { %v1481_v23 = vadd.f32 %v1479_v48, %v1463_v45  ;;  %v2528_v5 = vpop.eup %2527  ;;  %v1283_v26 = vmul.f32 1.442695, %v1252_v43  ;;  %v1422_v24 = vcombine.high %v3585_v0, %v3585_v0  ;;  %v1438_v27 = vrot.slane %v1421_v4, %v3432_v36 }
 0x557   : > { %v1482_v46 = vadd.f32 %v1480_v54, %v1464_v53  ;;  %v2530_v11 = vpop.eup %2529  ;;  %2541 = vpow2.f32 %v1273_v59  ;;  %v1442_v37 = vrot.slane %v1404_v19, %v3432_v36  ;;  %v1467_v56 = vmul.f32 %v1434_v7, %v3511_v57 }
 0x558   : > { %v1505_v8 = vmul.f32 %v2526_v62, %v1481_v23  ;;  %v2532_v29 = vpop.eup %2531  ;;  %v1468_v40 = vmul.f32 %v1434_v7, %v3513_v60  ;;  %2543 = vpow2.f32 %v1275_v63  ;;  %v1446_v33 = vrot.slane %v3585_v0, %v3432_v36  ;;  %v1597_v0 = vpop.permute.xlu0 %1596 }
 0x559   : > { %v1506_v16 = vmul.f32 %v2528_v5, %v1482_v46  ;;  %v1450_v42 = vrot.slane %v1420_v21, %v3432_v36  ;;  %v1469_v48 = vmul.f32 %v1438_v27, %v3515_v61  ;;  %v1494_v57 = vmul.f32 %v3561_v51, %v1481_v23  ;;  %v1593_v4 = vpop.permute.xlu1 %1592 }
 0x55a   : > { %v1507_v25 = vadd.f32 %v1505_v8, %v1465_v52  ;;  %v1495_v49 = vmul.f32 %v3559_v50, %v1482_v46  ;;  %2545 = vpow2.f32 %v1277_v6  ;;  %v1471_v61 = vmul.f32 %v1442_v37, %v3525_v10 }
 0x55b   : > { %v1508_v28 = vadd.f32 %v1506_v16, %v1466_v15  ;;  %v2534_v45 = vpop.eup %2533  ;;  %2547 = vpow2.f32 %v1279_v12  ;;  %v1496_v46 = vsel %vm955_vm5, %v1494_v57, 0.0  ;;  %v1454_v21 = vrot.slane %v1422_v24, %v3432_v36 }
 0x55c   : > { %v1531_v39 = vmul.f32 %v2530_v11, %v1507_v25  ;;  %v1520_v41 = vmul.f32 %v3573_v20, %v1507_v25  ;;  %v2536_v53 = vpop.eup %2535  ;;  %2549 = vpow2.f32 %v1281_v17  ;;  %v1474_v17 = vmul.f32 %v1446_v33, %v3531_v13 }
 0x55d   : > { %v1521_v43 = vmul.f32 %v3571_v18, %v1508_v28  ;;  %v1532_v38 = vmul.f32 %v2532_v29, %v1508_v28  ;;  %v1470_v18 = vmul.f32 %v1438_v27, %v3519_v3  ;;  %v1497_v3 = vsel %vm955_vm5, %v1495_v49, 0.0 }
 0x55e   : > { %v1533_v44 = vadd.f32 %v1531_v39, %v1467_v56  ;;  %v1522_v59 = vsel %vm955_vm5, %v1520_v41, 0.0  ;;  %v2538_v23 = vpop.eup %2537  ;;  %2551 = vpow2.f32 %v1283_v26  ;;  %v1498_v25 = vadd.f32 %v1497_v3, %v1496_v46  ;;  %v1623_v56 = vpop.permute.xlu0 %1622 }
 0x55f   : > { %v1534_v60 = vadd.f32 %v1532_v38, %v1468_v40  ;;  %v1523_v19 = vsel %vm955_vm5, %v1521_v43, 0.0  ;;  %v2540_v6 = vpop.eup %2539  ;;  %v1473_v27 = vmul.f32 %v1446_v33, %v3533_v14  ;;  %v1475_v38 = vmul.f32 %v1450_v42, %v3543_v32 }
 0x560   : > { %v1546_v20 = vmul.f32 %v1541_v58, %v1533_v44  ;;  %v1557_v54 = vmul.f32 %v2534_v45, %v1533_v44  ;;  %v1524_v7 = vadd.f32 %v1523_v19, %v1522_v59  ;;  %v1476_v14 = vmul.f32 %v1450_v42, %v3541_v22 }
 0x561   : > { %v1547_v62 = vmul.f32 %v1545_v55, %v1534_v60  ;;  %v1558_v63 = vmul.f32 %v2536_v53, %v1534_v60  ;;  %v1472_v55 = vmul.f32 %v1442_v37, %v3523_v9  ;;  %v2542_v16 = vpop.eup %2541  ;;  %v1499_v44 = vrot.slane %v1498_v25, 4 }
 0x562   : > { %v1548_v50 = vsel %vm955_vm5, %v1546_v20, 0.0  ;;  %v1559_v51 = vadd.f32 %v1557_v54, %v1469_v48  ;;  %v2544_v37 = vpop.eup %2543  ;;  %v1477_v60 = vmul.f32 %v1454_v21, %v3550_v34  ;;  %v1478_v42 = vmul.f32 %v1454_v21, %v3548_v31 }
 0x563   : > { %v1549_v58 = vsel %vm955_vm5, %v1547_v62, 0.0  ;;  %v1560_v5 = vadd.f32 %v1558_v63, %v1470_v18  ;;  %v1649_v62 = vpop.permute.xlu0 %1648  ;;  %v1500_v63 = vadd.f32 %v1499_v44, %v1498_v25 }
 0x564   : > { %v1550_v52 = vadd.f32 %v1549_v58, %v1548_v50  ;;  %v1572_v8 = vmul.f32 %v1567_v35, %v1559_v51  ;;  %v1583_v10 = vmul.f32 %v2538_v23, %v1559_v51  ;;  %v1619_v35 = vpop.permute.xlu1 %1618  ;;  %v2546_v43 = vpop.eup %2545 }
 0x565   : > { %v1573_v12 = vmul.f32 %v1571_v1, %v1560_v5  ;;  %v1584_v15 = vmul.f32 %v2540_v6, %v1560_v5  ;;  %v1525_v1 = vrot.slane %v1524_v7, 4  ;;  %v2548_v33 = vpop.eup %2547  ;;  %v1501_v31 = vrot.slane %v1500_v63, 2 }
 0x566   : > { %v1574_v11 = vsel %vm955_vm5, %v1572_v8, 0.0  ;;  %v1585_v29 = vadd.f32 %v1583_v10, %v1471_v61  ;;  %v1551_v39 = vrot.slane %v1550_v52, 4  ;;  %v2550_v61 = vpop.eup %2549 }
 0x567   : > { %v1575_v28 = vsel %vm955_vm5, %v1573_v12, 0.0  ;;  %v1586_v9 = vadd.f32 %v1584_v15, %v1472_v55  ;;  %v1526_v53 = vadd.f32 %v1525_v1, %v1524_v7 }
 0x568   : > { %v1576_v40 = vadd.f32 %v1575_v28, %v1574_v11  ;;  %v1598_v26 = vmul.f32 %v1593_v4, %v1585_v29  ;;  %v1609_v36 = vmul.f32 %v2542_v16, %v1585_v29  ;;  %v1552_v18 = vadd.f32 %v1551_v39, %v1550_v52  ;;  %v1645_v22 = vpop.permute.xlu1 %1644  ;;  %v2552_v46 = vpop.eup %2551 }
 0x569   : > { %v1599_v41 = vmul.f32 %v1597_v0, %v1586_v9  ;;  %v1610_v24 = vmul.f32 %v2544_v37, %v1586_v9  ;;  %v1527_v3 = vrot.slane %v1526_v53, 2  ;;  %v1502_v39 = vadd.f32 %v1501_v31, %v1500_v63 }
 0x56a   : > { %v1577_v45 = vrot.slane %v1576_v40, 4  ;;  %v1600_v48 = vsel %vm955_vm5, %v1598_v26, 0.0  ;;  %v1611_v49 = vadd.f32 %v1609_v36, %v1473_v27  ;;  %v1553_v58 = vrot.slane %v1552_v18, 2  ;;  %v1675_v27 = vpop.permute.xlu0 %1674 }
 0x56b   : > { %v1601_v57 = vsel %vm955_vm5, %v1599_v41, 0.0  ;;  %v1612_v13 = vadd.f32 %v1610_v24, %v1474_v17  ;;  %v1528_v29 = vadd.f32 %v1527_v3, %v1526_v53 }
 0x56c   : > { %v1602_v20 = vadd.f32 %v1601_v57, %v1600_v48  ;;  %v1624_v54 = vmul.f32 %v1619_v35, %v1611_v49  ;;  %v1635_v19 = vmul.f32 %v2546_v43, %v1611_v49  ;;  %v1578_v0 = vadd.f32 %v1577_v45, %v1576_v40  ;;  %v1671_v28 = vpop.permute.xlu1 %1670 }
 0x56d   : > { %v1625_v59 = vmul.f32 %v1623_v56, %v1612_v13  ;;  %v1636_v32 = vmul.f32 %v2548_v33, %v1612_v13  ;;  %v1711_v56 = vmul.f32 0.5, %v3442_v47  ;;  %v1554_v35 = vadd.f32 %v1553_v58, %v1552_v18 }
 0x56e   : > { %v1603_v4 = vrot.slane %v1602_v20, 4  ;;  %v1626_v50 = vsel %vm955_vm5, %v1624_v54, 0.0  ;;  %v1637_v34 = vadd.f32 %v1635_v19, %v1475_v38  ;;  %v1579_v12 = vrot.slane %v1578_v0, 2 }
 0x56f   : > { %v1627_v51 = vsel %vm955_vm5, %v1625_v59, 0.0  ;;  %v1638_v23 = vadd.f32 %v1636_v32, %v1476_v14  ;;  %v1529_v38 = vrot.slane %v1528_v29, 1  ;;  %2553 = vtanh.f32 %v1711_v56 }
 0x570   : > { %v1604_v5 = vadd.f32 %v1603_v4, %v1602_v20  ;;  %v1628_v6 = vadd.f32 %v1627_v51, %v1626_v50  ;;  %v1650_v55 = vmul.f32 %v1645_v22, %v1637_v34  ;;  %v1661_v52 = vmul.f32 %v2550_v61, %v1637_v34 }
 0x571   : > { %v1651_v7 = vmul.f32 %v1649_v62, %v1638_v23  ;;  %v1662_v8 = vmul.f32 %v2552_v46, %v1638_v23  ;;  %v1580_v40 = vadd.f32 %v1579_v12, %v1578_v0  ;;  %v1555_v48 = vrot.slane %v1554_v35, 1 }
 0x572   : > { %v1605_v10 = vrot.slane %v1604_v5, 2  ;;  %v1629_v15 = vrot.slane %v1628_v6, 4  ;;  %v1652_v16 = vsel %vm955_vm5, %v1650_v55, 0.0  ;;  %v1663_v25 = vadd.f32 %v1661_v52, %v1477_v60 }
 0x573   : > { %v1653_v21 = vsel %vm955_vm5, %v1651_v7, 0.0  ;;  %v1664_v11 = vadd.f32 %v1662_v8, %v1478_v42  ;;  %v1503_v57 = vrot.slane %v1502_v39, 1  ;;  %v1581_v49 = vrot.slane %v1580_v40, 1  ;;  %v2226_v7 = vld [vmem:[#allocation19] ss:$0 sm:$0xff] }
 0x574   : > { %v1654_v9 = vadd.f32 %v1653_v21, %v1652_v16  ;;  %v1630_v37 = vadd.f32 %v1629_v15, %v1628_v6  ;;  %v1676_v17 = vmul.f32 %v1671_v28, %v1663_v25  ;;  %v1606_v36 = vadd.f32 %v1605_v10, %v1604_v5  ;;  %v2557_v25 = vld [vmem:[%s3352_s18] sm:$0xff]  ;;  %s3815_s18 = sld [smem:[#allocation41_spill]] }
 0x575   : > { %v1677_v1 = vmul.f32 %v1675_v27, %v1664_v11  ;;  %v1530_v53 = vadd.f32 %v1529_v38, %v1528_v29  ;;  %v1556_v59 = vadd.f32 %v1555_v48, %v1554_v35  ;;  %v1504_v19 = vadd.f32 %v1503_v57, %v1502_v39  ;;  %v2506_v48 = vld [vmem:[%s3816_s20 + $0x8] sm:$0xff]   ;;  %v2507_v57 = vld [vmem:[%s3816_s20 + $0x10] sm:$0xff]  }
 0x576   : > { %v1631_v26 = vrot.slane %v1630_v37, 2  ;;  %v1655_v41 = vrot.slane %v1654_v9, 4  ;;  %v1678_v24 = vsel %vm955_vm5, %v1676_v17, 0.0  ;;  %v1607_v60 = vrot.slane %v1606_v36, 1 }
 0x577   : > { %v1679_v43 = vsel %vm955_vm5, %v1677_v1, 0.0  ;;  %v1582_v32 = vadd.f32 %v1581_v49, %v1580_v40  ;;  %v1688_v4 = vsel %vm1687_vm9, %v1504_v19, %v1530_v53  ;;  %v1709_v8 = vmul.f32 %v2226_v7, %v3446_v2  ;;  %v2508_v49 = vld [vmem:[%s3816_s20 + $0x18] sm:$0xff]  }
 0x578   : > { %v1632_v14 = vadd.f32 %v1631_v26, %v1630_v37  ;;  %v1656_v44 = vadd.f32 %v1655_v41, %v1654_v9  ;;  %v1680_v45 = vadd.f32 %v1679_v43, %v1678_v24  ;;  %v1608_v42 = vadd.f32 %v1607_v60, %v1606_v36  ;;  %v2232_v36 = vld [vmem:[#allocation21] ss:$0 sm:$0xff]  ;;  %v2233_v43 = vld [vmem:[#allocation22] ss:$0 sm:$0xff] }
 0x579   : > { %v1689_v50 = vsel %vm1052_vm6, %v1688_v4, %v1556_v59  ;;  %v2554_v23 = vpop.eup %2553  ;;  %v2511_v60 = vld [vmem:[%s3816_s20 + $0x30] sm:$0xff]   ;;  %v2512_v53 = vld [vmem:[%s3816_s20 + $0x38] sm:$0xff]  }
 0x57a   : > { %v1657_v13 = vrot.slane %v1656_v44, 2  ;;  %v1681_v33 = vrot.slane %v1680_v45, 4  ;;  %v1633_v18 = vrot.slane %v1632_v14, 1  ;;  %v1691_v34 = vsel %vm1690_vm10, %v1689_v50, %v1582_v32  ;;  %v2503_v17 = vld [vmem:[%s3815_s18] sm:$0xff]   ;;  %v2504_v1 = vld [vmem:[%s3815_s18 + $0x8] sm:$0xff]  }
 0x57b   : > { %v1693_v46 = vsel %vm1692_vm11, %v1691_v34, %v1608_v42  ;;  %v1713_v55 = vadd.f32 1.0, %v2554_v23  ;;  %2305 = vmatpush3.bf16.msra.mxu1 %v2503_v17  ;;  %v2238_v42 = vld [vmem:[%s3818_s2] ss:$0 sm:$0xff]  ;;  %s2846_s2 = scalar_lea.vmem %s2845_s26, 256 }
 0x57c   : > { %v1658_v20 = vadd.f32 %v1657_v13, %v1656_v44  ;;  %v1682_v54 = vadd.f32 %v1681_v33, %v1680_v45  ;;  %v1634_v63 = vadd.f32 %v1633_v18, %v1632_v14  ;;  %2306 = vmatprep.subr.bf16.mxu1 %v2941_v30  ;;  %v2505_v44 = vld [vmem:[%s3816_s20] sm:$0xff]   ;;  %v2510_v33 = vld [vmem:[%s3816_s20 + $0x28] sm:$0xff]   ;;  %p2848_p11 = scmp.lt.s32.totalorder %s2846_s2, %s2840_s14 }
 0x57d   : > { %v1714_v52 = vmul.f32 0.5, %v1713_v55  ;;  %v2509_v13 = vld [vmem:[%s3816_s20 + $0x20] sm:$0xff]  }
 0x57e   : > { %v1659_v62 = vrot.slane %v1658_v20, 1  ;;  %v1683_v22 = vrot.slane %v1682_v54, 2  ;;  %v1695_v58 = vsel %vm1694_vm12, %v1693_v46, %v1634_v63  ;;  %v2234_v18 = vld [vmem:[%s3817_s0] ss:$0 sm:$0xff]  ;;  %p2849_p12 = por %p2848_p11, %p2847_p6 }
 0x57f   : > { %v1715_v12 = vmul.f32 %v1714_v52, %v3442_v47  ;;  %2307 = vmatpush3.bf16.msra.mxu1 %v2504_v1 }
 0x580   : > { %v1684_v0 = vadd.f32 %v1683_v22, %v1682_v54  ;;  %v1660_v61 = vadd.f32 %v1659_v62, %v1658_v20  ;;  %2312 = vmatprep.subr.bf16.mxu1 %v2941_v30  ;;  %p2850_p8 = pnand %p2849_p12, %p2843_p0 }
 0x582   : > { %v1685_v51 = vrot.slane %v1684_v0, 1  ;;  %v1697_v5 = vsel %vm1696_vm13, %v1695_v58, %v1660_v61 }
 0x584   : > { %v1686_v3 = vadd.f32 %v1685_v51, %v1684_v0 }
 0x586   : > { %v1699_v6 = vsel %vm1698_vm14, %v1697_v5, %v1686_v3 }
 0x587   : > { %1700 = vst.msk [vmem:[#allocation6] sm:$0xff] %vm955_vm5, %v1699_v6 }
 0x58e   : > { %v1701_v31 = vld [vmem:[#allocation6] sm:$0xff] }
 0x58f   : > { %v1710_v10 = vadd.f32 %v1709_v8, %v1701_v31 }
 0x591   : > { %v1716_v15 = vmul.f32 %v1715_v12, %v1710_v10 }
 0x593   : > { %v1725_v16 = vpack.c.bf16 %v1716_v15, %v1716_v15 }
 0x595   : > { %2301 = vmatmul.mubr.msk.bf16.vlgmr.msra.gmra.mrb[12].mxu0 %vm955_vm5, %v1725_v16 }
 0x668   : > { %v1787_v21 = vpop.f32.mrb[12].mxu0 }
 0x669   : > { %v3637_v11 = vadd.f32 %v2557_v25, %v1787_v21  ;;  %v2302_v27 = vpop.f32.mrb[13].mxu0 }
 0x66a   : > { %v1790_v28 = vpop.f32.mrb[14].mxu0 }
 0x66b   : > { %v2303_v29 = vpop.f32.mrb[15].mxu0  ;;  %v1816_v9 = vsel %vm714_vm0, %v3637_v11, 0.0 }
 0x66c   : > { %1817 = vadd.xlane.f32.xlu1 %v1816_v9 }
 0x6f9   : > { %v1818_v2 = vpop.xlane.xlu1 %1817 }
 0x6fa   : > { %v1819_v37 = vmul.f32 0.03125, %v1818_v2 }
 0x6fc   : > { %v1820_v47 = vsub.f32 %v3637_v11, %v1819_v37 }
 0x6fe   : > { %v1821_v56 = vmul.f32 %v1820_v47, %v1820_v47 }
 0x700   : > { %v1822_v35 = vsel %vm714_vm0, %v1821_v56, 0.0 }
 0x701   : > { %1823 = vadd.xlane.f32.xlu0 %v1822_v35 }
 0x78e   : > { %v1824_v39 = vpop.xlane.xlu0 %1823 }
 0x78f   : > { %v1825_v40 = vmul.f32 0.03125, %v1824_v39 }
 0x791   : > { %v1826_v26 = vadd.f32 1e-05, %v1825_v40 }
 0x793   : > { %2555 = vrsqrt.f32 %v1826_v26 }
 0x79d   : > { %v2556_v41 = vpop.eup %2555 }
 0x79e   : > { %v1828_v24 = vmul.f32 %v2556_v41, %v1820_v47 }
 0x7a0   : > { %v1835_v38 = vmul.f32 %v2232_v36, %v1828_v24 }
 0x7a2   : > { %v1842_v14 = vadd.f32 %v2233_v43, %v1835_v38 }
 0x7a4   : > { %v1843_v45 = vpack.c.bf16 %v1842_v14, %v1842_v14 }
 0x7a6   : > { %2309 = vmatmul.mubr.msk.bf16.vlgmr.msra.gmra.mrb[4].mxu1 %vm714_vm0, %v1843_v45 }
 0x7a7   : > { %2313 = vmatpush3.bf16.msra.mxu1 %v2505_v44  ;;  %2328 = vmatprep.mubr.msk.bf16.mxu1 %vm2942_vm1, %v2941_v30 }
 0x7a8   : > { %2314 = vmatprep.subr.bf16.mxu1 %v2941_v30 }
 0x7ab   : > { %2315 = vmatpush3.bf16.msra.mxu1 %v2506_v48 }
 0x7ac   : > { %2316 = vmatprep.subr.bf16.mxu1 %v2941_v30 }
 0x7af   : > { %2317 = vmatpush3.bf16.msra.mxu1 %v2507_v57 }
 0x7b0   : > { %2318 = vmatprep.subr.bf16.mxu1 %v2941_v30 }
 0x7b3   : > { %2319 = vmatpush3.bf16.msra.mxu1 %v2508_v49 }
 0x7b4   : > { %2320 = vmatprep.subr.bf16.mxu1 %v2941_v30 }
 0x7b7   : > { %2321 = vmatpush3.bf16.msra.mxu1 %v2509_v13 }
 0x7b8   : > { %2322 = vmatprep.subr.bf16.mxu1 %v2941_v30 }
 0x7bb   : > { %2323 = vmatpush3.bf16.msra.mxu1 %v2510_v33 }
 0x7bc   : > { %2324 = vmatprep.subr.bf16.mxu1 %v2941_v30 }
 0x7bf   : > { %2325 = vmatpush3.bf16.msra.mxu1 %v2511_v60 }
 0x7c0   : > { %2326 = vmatprep.subr.bf16.mxu1 %v2941_v30 }
 0x7c3   : > { %2327 = vmatpush3.bf16.msra.mxu1 %v2512_v53 }
 0x879   : > { %v1900_v20 = vpop.f32.mrb[4].mxu1 }
 0x87a   : > { %v1901_v54 = vadd.f32 %v2234_v18, %v1900_v20  ;;  %v2310_v59 = vpop.f32.mrb[5].mxu1 }
 0x87b   : > { %v1903_v19 = vpop.f32.mrb[6].mxu1 }
 0x87c   : > { %v1906_v32 = vmax.f32 %v1901_v54, 0.0  ;;  %v2311_v62 = vpop.f32.mrb[7].mxu1 }
 0x87e   : > { %v1907_v22 = vpack.c.bf16 %v1906_v32, %v1906_v32 }
 0x880   : > { %2329 = vmatmul.mubr.bf16.vlgmr.msra.gmra.mrb[8].mxu1 %v1907_v22 }
 0x953   : > { %v1997_v30 = vpop.f32.mrb[8].mxu1 }
 0x954   : > { %v1998_v63 = vadd.f32 %v2238_v42, %v1997_v30  ;;  %v2330_v0 = vpop.f32.mrb[9].mxu1 }
 0x955   : > { %v2000_v4 = vpop.f32.mrb[10].mxu1 }
 0x956   : > { %v2003_v61 = vadd.f32 %v1998_v63, %v3637_v11  ;;  %v2331_v50 = vpop.f32.mrb[11].mxu1 }
 0x958   : > { %2004 = vst.msk [vmem:[%s705_s15] sm:$0xff] %vm714_vm0, %v2003_v61 }
 0x959   : > { %2853 = shalt.err (!%p2850_p8)
}
 0x95a   : > { %s2854_s25 = scalar_lea.hbm %s3698_s6, 128  ;;  %s2858_s21 = scalar_lea.hbm %s3819_s3, 256 }
 0x95b   : > { %p2855_p5 = scmp.ne.s32.totalorder %s3698_s6, %s2854_s25  ;;  %p2859_p10 = scmp.lt.u32.totalorder %s3698_s6, %s3819_s3 }
 0x95c   : > { %p2860_p4 = scmp.lt.u32.totalorder %s2858_s21, %s2854_s25  ;;  %p2862_p1 = scmp.lt.u32.totalorder %s2854_s25, %s3698_s6 }
 0x95d   : > { %p2856_p9 = pnand %p2855_p5, %p3820_p3 }
 0x95e   : > { %p2861_p13 = por %p2860_p4, %p2859_p10 }
 0x95f   : > { %p2857_p7 = pneg %p2856_p9 }
 0x960   : > { %p2863_p2 = por %p2862_p1, %p2861_p13 }
 0x962   : > { %p2864_p0 = pnand %p2863_p2, %p2857_p7 }
 0x964   : > { %2867 = shalt.err (!%p2864_p0)
}
 0x965   : > { %2370 = dma.vmem_to_hbm [thread:$0]  (%p3820_p3), %s3700_s11, 128, %s3698_s6, %s2006_s1  }
 0x966 PF: > { %s2031_s14 = sand.u32 1, %s2914_s27   ;;  %p3821_p6 = scmp.ne.s32.totalorder %s3797_s7, 0 }
 0x967   : > { %p3822_p11 = scmp.ge.s32.totalorder %s2926_s30, 2  ;;  %s2032_s26 = scalar_lea.sflag [#allocation9], %s2031_s14 }
 0x969   : > { %p2405_p12 = pnand %p3822_p11, %p3821_p6 }
 0x96b   : > { %2909 = dma.done.wait (!%p2405_p12), %s2032_s26, 128  }
 0x96c   : > { %2911 = vsyncadd (!%p2405_p12), %s2032_s26, 4294967168  ;;  %p36_p8 = scmp.ge.s32.totalorder %s3276_s24, 4   ;;  %s3823_s27 = smov %s2918_s28 }
 0x96d   : > { %s3824_s28 = smov %s2922_s29  ;;  %s3825_s29 = smov %s3288_s4 }
 0x96e   : > { %s3826_s30 = smov %s3276_s24  ;;  %38 = sbr.rel (!%p36_p8) target bundleno = 25 (0x19), region = 173 }
 0x975   :  { %2037 = vsyncpa [#allocation8], 1 }
 0x976   :  { %2039 = vsyncpa [#allocation8 + $0x1], 1 }
 0x977   :  { %2040 = vsyncpa [#allocation11], 1 }
 0x978   :  { %2041 = vsyncpa [#allocation14], 1 }
 0x979   :  { %2042 = vsyncpa [#allocation17], 1 }
 0x97a   :  { %2043 = vsyncpa [#allocation20], 1 }
 0x97b   :  { %2044 = vsyncpa [#allocation23], 1 }
 0x97c   :  { %2045 = vsyncpa [#allocation9], 1 }
 0x97d   :  { %2047 = vsyncpa [#allocation9 + $0x1], 1 }

</bundles_post_ra>
